<compile_context>
chip_gen: v5e
topology: v5e:2x2
jax: 0.10.0
libtpu: 0.0.40
codegen_flags: <defaults>
</compile_context>

<pallas_src>
import functools

import jax
import jax.numpy as jnp
import numpy as np
from jax.experimental import pallas as pl
from jax.experimental.pallas import tpu as pltpu

STATE_DIM = 27
ACTION_DIM = 3
HID_LAYER1 = 400
HID_LAYER2 = 300
WFINAL = 0.003
BN_EPS = 1e-5

# Lane-padded sizes (multiples of 128).
S_PAD = 128    # 27 state dims + 3 action dims embedded at cols 27..29, rest 0
H1_PAD = 512   # 400 -> 512
H2_PAD = 384   # 300 -> 384


def _round_up(x, m):
    return ((x + m - 1) // m) * m


# ---------------------------------------------------------------------------
# Pass 1: per-tile BatchNorm statistics of h1 = ReLU(ip @ W1 + b1).
# Only the (1, 2, H1_PAD) stats block is written — h1 never touches HBM.
# ---------------------------------------------------------------------------
def _fc1_stats_kernel(nvalid_ref, ip_ref, w1_ref, b1_ref, stats_ref, *, mask_last):
    h1 = jnp.dot(ip_ref[...], w1_ref[...], preferred_element_type=jnp.float32)
    h1 = jnp.maximum(h1 + b1_ref[...], 0.0)                   # (TB, H1_PAD)

    def write(h):
        ssum = jnp.sum(h, axis=0, keepdims=True)               # (1, H1_PAD)
        ssq = jnp.sum(h * h, axis=0, keepdims=True)            # (1, H1_PAD)
        stats_ref[...] = jnp.concatenate([ssum, ssq], axis=0)[None]

    if mask_last:
        # Only the partial last tile pays for the row mask (trace-time flag).
        i = pl.program_id(0)
        last = pl.num_programs(0) - 1
        tb = ip_ref.shape[0]

        @pl.when(i != last)
        def _():
            write(h1)

        @pl.when(i == last)
        def _():
            row = i * tb + jax.lax.broadcasted_iota(jnp.int32, h1.shape, 0)
            write(jnp.where(row < nvalid_ref[0], h1, 0.0))
    else:
        write(h1)


# ---------------------------------------------------------------------------
# Pass 2: recompute h1, apply folded BN (scale/shift), fused fc2 (+ action via
# a second resident matmul on ip's padding lanes), ReLU, fc3 as w3 @ h2^T so
# the per-tile Q result is produced lane-dense as a (1, TB) row.
# ---------------------------------------------------------------------------
def _bn_fc2_fc3_kernel(b3_ref, ip_ref, w1_ref, b1_ref, scale_ref, shift_ref,
                       w2h_ref, w2a_ref, b2_ref, w3_ref, q_ref):
    ip = ip_ref[...]                                           # (TB, S_PAD)
    h1 = jnp.dot(ip, w1_ref[...], preferred_element_type=jnp.float32)
    h1 = jnp.maximum(h1 + b1_ref[...], 0.0)                    # (TB, H1_PAD)

    # Folded BatchNorm (scale/shift precomputed once in the wrapper).
    x = (h1 * scale_ref[...] + shift_ref[...]).astype(w2h_ref.dtype)

    # fc2: hidden part + action part (action lives in ip cols 27..29; W2_act
    # rows elsewhere are zero, so this realises cat([h1_norm, action]) @ W2^T).
    h2 = (jnp.dot(x, w2h_ref[...], preferred_element_type=jnp.float32)
          + jnp.dot(ip, w2a_ref[...], preferred_element_type=jnp.float32)
          + b2_ref[...])
    h2 = jnp.maximum(h2, 0.0)                                  # (TB, H2_PAD)

    # fc3: w3 (8, H2_PAD; only row 0 non-zero) contracted with h2's lane axis
    # -> (8, TB); row 0 is the Q row, already lane-dense.
    q8 = jax.lax.dot_general(w3_ref[...], h2, (((1,), (1,)), ((), ())),
                             preferred_element_type=jnp.float32)
    q_ref[...] = q8[0:1, :] + b3_ref[0]                        # (1, TB)


# ---------------------------------------------------------------------------
# Wrapper
# ---------------------------------------------------------------------------
def critic_forward(ip, action, padded_params, tile_rows=512):
    """ip: (B, 27), action: (B, 3) -> (B, 1) Q-values."""
    p = padded_params
    B = ip.shape[0]
    cdtype = p["w1"].dtype          # streamed / MXU operand dtype (f32 or bf16)

    # Batch tiling: single tile for small batches, else a 128-aligned tile so
    # every BlockSpec (incl. the lane-dense Q row) stays (8,128)-legal.
    if B <= tile_rows:
        TB = _round_up(max(B, 1), 8)
    else:
        TB = _round_up(tile_rows, 128)
    B_pad = _round_up(B, TB)
    num_tiles = B_pad // TB
    needs_mask = B_pad != B

    # Pack state + action into one lane-padded tile (cols 27..29 = action).
    ip_full = jnp.zeros((B_pad, S_PAD), cdtype)
    ip_full = ip_full.at[:B, :STATE_DIM].set(ip.astype(cdtype))
    ip_full = ip_full.at[:B, STATE_DIM:STATE_DIM + ACTION_DIM].set(
        action.astype(cdtype))

    n_valid = jnp.array([B], dtype=jnp.int32)

    smem = pl.BlockSpec(memory_space=pltpu.MemorySpace.SMEM)
    res = lambda shape: pl.BlockSpec(shape, lambda i: (0,) * len(shape))  # resident
    rows = lambda shape: pl.BlockSpec(shape, lambda i: (i, 0))            # batch-tiled

    # ---- pass 1: fc1 + ReLU -> per-tile batch statistics (no h1 writeback) ----
    stats_tiles = pl.pallas_call(
        functools.partial(_fc1_stats_kernel, mask_last=needs_mask),
        out_shape=jax.ShapeDtypeStruct((num_tiles, 2, H1_PAD), jnp.float32),
        grid=(num_tiles,),
        in_specs=[smem,                       # n_valid
                  rows((TB, S_PAD)),          # ip tile
                  res((S_PAD, H1_PAD)),       # W1 (resident)
                  res((1, H1_PAD))],          # b1 (resident)
        out_specs=pl.BlockSpec((1, 2, H1_PAD), lambda i: (i, 0, 0)),
        compiler_params=pltpu.CompilerParams(
            dimension_semantics=("parallel",)),       # v7x: both TCs busy
    )(n_valid, ip_full, p["w1"], p["b1"])

    # ---- BN fold (tiny, done ONCE — not per grid step) ----
    # NOTE: variance as E[x^2]-E[x]^2 in f32 is fine at these activation scales.
    n = jnp.float32(B)
    stats = jnp.sum(stats_tiles, axis=0)                       # (2, H1_PAD)
    mean = stats[0] / n
    var = jnp.maximum(stats[1] / n - mean * mean, 0.0)
    inv_std = 1.0 / jnp.sqrt(var + BN_EPS)                     # exact, not approx
    scale = (p["gamma"][0] * inv_std)[None, :]                 # padded lanes -> 0
    shift = (p["beta"][0] - mean * p["gamma"][0] * inv_std)[None, :]

    # ---- pass 2: recompute h1 + BN + fused fc2 + fc3 (lane-dense Q row) ----
    q_row = pl.pallas_call(
        _bn_fc2_fc3_kernel,
        out_shape=jax.ShapeDtypeStruct((1, B_pad), jnp.float32),
        grid=(num_tiles,),
        in_specs=[smem,                       # b3 scalar
                  rows((TB, S_PAD)),          # ip tile (only streamed tensor)
                  res((S_PAD, H1_PAD)),       # W1
                  res((1, H1_PAD)),           # b1
                  res((1, H1_PAD)),           # scale
                  res((1, H1_PAD)),           # shift
                  res((H1_PAD, H2_PAD)),      # W2 (hidden rows)
                  res((S_PAD, H2_PAD)),       # W2 (action rows, on ip lanes)
                  res((1, H2_PAD)),           # b2
                  res((8, H2_PAD))],          # W3 (row 0)
        out_specs=pl.BlockSpec((1, TB), lambda i: (0, i)),
        compiler_params=pltpu.CompilerParams(
            dimension_semantics=("parallel",)),
    )(p["b3"], ip_full, p["w1"], p["b1"], scale, shift,
      p["w2h"], p["w2a"], p["b2"], p["w3"])

    return q_row[0, :B, None]                                  # (B, 1)


# ---------------------------------------------------------------------------
# Parameter construction (mirrors the PyTorch module's __init__)
# ---------------------------------------------------------------------------
def init_params(key):
    """Logical (unpadded) params mirroring the PyTorch module."""
    keys = jax.random.split(key, 6)

    def fanin_uniform(k, shape, fanin):
        w = 1.0 / np.sqrt(fanin)
        return jax.random.uniform(k, shape, jnp.float32, -w, w)

    # fc1.weight (400,27) via fanin_init (fanin=size[0]=400); stored transposed.
    w1 = fanin_uniform(keys[0], (STATE_DIM, HID_LAYER1), HID_LAYER1)
    b1 = fanin_uniform(keys[1], (HID_LAYER1,), STATE_DIM)      # default Linear bias
    gamma = jnp.ones((HID_LAYER1,), jnp.float32)               # BatchNorm1d defaults
    beta = jnp.zeros((HID_LAYER1,), jnp.float32)
    # fc2.weight (300,403) via fanin_init (fanin=300); stored transposed (403,300).
    w2 = fanin_uniform(keys[2], (HID_LAYER1 + ACTION_DIM, HID_LAYER2), HID_LAYER2)
    b2 = fanin_uniform(keys[3], (HID_LAYER2,), HID_LAYER1 + ACTION_DIM)
    # fc3.weight (1,300) ~ U(-WFINAL, WFINAL); stored as (300,).
    w3 = jax.random.uniform(keys[4], (HID_LAYER2,), jnp.float32, -WFINAL, WFINAL)
    b3 = fanin_uniform(keys[5], (), HID_LAYER2)
    return dict(w1=w1, b1=b1, gamma=gamma, beta=beta, w2=w2, b2=b2, w3=w3, b3=b3)


def pad_params(p, compute_dtype=jnp.bfloat16):
    """Zero-pad params to lane-aligned kernel shapes (done once, not per call).

    `compute_dtype` is the MXU-operand dtype for the weights (bf16 recommended
    on v6e/v7x; f32 for bit-tight comparisons).  Biases/BN params stay f32.
    """
    w1 = jnp.zeros((S_PAD, H1_PAD), jnp.float32).at[:STATE_DIM, :HID_LAYER1].set(p["w1"])
    b1 = jnp.zeros((1, H1_PAD), jnp.float32).at[0, :HID_LAYER1].set(p["b1"])
    gamma = jnp.zeros((1, H1_PAD), jnp.float32).at[0, :HID_LAYER1].set(p["gamma"])
    beta = jnp.zeros((1, H1_PAD), jnp.float32).at[0, :HID_LAYER1].set(p["beta"])
    # Split fc2: rows [0,400) act on h1_norm, rows [400,403) act on the action
    # (placed at ip lanes 27..29).
    w2h = jnp.zeros((H1_PAD, H2_PAD), jnp.float32)
    w2h = w2h.at[:HID_LAYER1, :HID_LAYER2].set(p["w2"][:HID_LAYER1])
    w2a = jnp.zeros((S_PAD, H2_PAD), jnp.float32)
    w2a = w2a.at[STATE_DIM:STATE_DIM + ACTION_DIM, :HID_LAYER2].set(p["w2"][HID_LAYER1:])
    b2 = jnp.zeros((1, H2_PAD), jnp.float32).at[0, :HID_LAYER2].set(p["b2"])
    w3 = jnp.zeros((8, H2_PAD), jnp.float32).at[0, :HID_LAYER2].set(p["w3"])
    b3 = jnp.reshape(p["b3"].astype(jnp.float32), (1,))
    return dict(w1=w1.astype(compute_dtype), b1=b1, gamma=gamma, beta=beta,
                w2h=w2h.astype(compute_dtype), w2a=w2a.astype(compute_dtype),
                b2=b2, w3=w3, b3=b3)


def critic_ref(ip, action, p):
    """Pure-JAX f32 reference of the PyTorch forward (training-mode BN)."""
    hi = jax.lax.Precision.HIGHEST
    h1 = jnp.maximum(jnp.dot(ip, p["w1"], precision=hi) + p["b1"], 0.0)
    mean = jnp.mean(h1, axis=0, keepdims=True)
    var = jnp.mean((h1 - mean) ** 2, axis=0, keepdims=True)    # biased variance
    h1n = (h1 - mean) / jnp.sqrt(var + BN_EPS) * p["gamma"] + p["beta"]
    x = jnp.concatenate([h1n, action], axis=1)
    h2 = jnp.maximum(jnp.dot(x, p["w2"], precision=hi) + p["b2"], 0.0)
    return jnp.dot(h2, p["w3"][:, None], precision=hi) + p["b3"]


if __name__ == "__main__":
    key = jax.random.PRNGKey(0)
    k1, k2, k3, k4, kp = jax.random.split(key, 5)

    params = init_params(kp)
    params_f32 = pad_params(params, jnp.float32)
    params_bf16 = pad_params(params, jnp.bfloat16)

    fwd = jax.jit(critic_forward, static_argnames=("tile_rows",))

    # Case 1: tiny batch, single tile, f32 operands — tight check vs reference.
    B = 6
    ip = jax.random.normal(k1, (B, STATE_DIM), jnp.float32)
    act = jax.random.normal(k2, (B, ACTION_DIM), jnp.float32)
    q = jax.block_until_ready(fwd(ip, act, params_f32))
    q_ref = critic_ref(ip, act, params)
    np.testing.assert_allclose(np.asarray(q), np.asarray(q_ref),
                               rtol=1e-4, atol=1e-4)

    # Case 2: multi-tile with a masked partial last tile, f32 operands.
    B = 300
    ip = jax.random.normal(k3, (B, STATE_DIM), jnp.float32)
    act = jax.random.normal(k4, (B, ACTION_DIM), jnp.float32)
    q = jax.block_until_ready(fwd(ip, act, params_f32, tile_rows=128))
    q_ref = critic_ref(ip, act, params)
    np.testing.assert_allclose(np.asarray(q), np.asarray(q_ref),
                               rtol=1e-4, atol=1e-4)

    # Case 3: same batch with bf16 MXU operands (v6e/v7x throughput path).
    q = jax.block_until_ready(fwd(ip, act, params_bf16, tile_rows=128))
    np.testing.assert_allclose(np.asarray(q), np.asarray(q_ref),
                               rtol=2e-2, atol=2e-2)

    print("KERNEL_OK")
</pallas_src>

<mosaic_0001>
module attributes {stable_mosaic.version = 11 : i64} {
  func.func @_fc1_stats_kernel(%arg0: i32, %arg1: memref<1xi32, #tpu.memory_space<smem>>, %arg2: memref<8x128xf32, #tpu.memory_space<vmem>>, %arg3: memref<128x512xf32, #tpu.memory_space<vmem>>, %arg4: memref<1x512xf32, #tpu.memory_space<vmem>>, %arg5: memref<1x2x512xf32, #tpu.memory_space<vmem>>) attributes {dimension_semantics = [#tpu.dimension_semantics<parallel>], iteration_bounds = array<i64: 1>, scalar_prefetch = 0 : i64, scratch_operands = 0 : i64, tpu.core_type = #tpu.core_type<tc>, window_params = [{transform_indices = @transform_0, window_bounds = array<i64: 1>}, {transform_indices = @transform_1, window_bounds = array<i64: 8, 128>}, {pipeline_mode = #tpu.pipeline_mode<synchronous>, transform_indices = @transform_2, window_bounds = array<i64: 128, 512>}, {pipeline_mode = #tpu.pipeline_mode<synchronous>, transform_indices = @transform_3, window_bounds = array<i64: 1, 512>}, {transform_indices = @transform_4, window_bounds = array<i64: 1, 2, 512>}]} {
    %c0 = arith.constant 0 : index
    %c0_0 = arith.constant 0 : index
    %0 = vector.load %arg2[%c0, %c0_0] : memref<8x128xf32, #tpu.memory_space<vmem>>, vector<8x128xf32>
    %c0_1 = arith.constant 0 : index
    %c0_2 = arith.constant 0 : index
    %1 = vector.load %arg3[%c0_1, %c0_2] : memref<128x512xf32, #tpu.memory_space<vmem>>, vector<128x512xf32>
    %cst = arith.constant dense<0.000000e+00> : vector<8x512xf32>
    %2 = tpu.matmul %0, %1, %cst {dimension_numbers = #tpu.dot_dimension_numbers<[1], [0], [0], [1], [0, 0, 1, 1], [], []>} : vector<8x128xf32>, vector<128x512xf32>, vector<8x512xf32> -> vector<8x512xf32>
    %c0_3 = arith.constant 0 : index
    %c0_4 = arith.constant 0 : index
    %3 = vector.load %arg4[%c0_3, %c0_4] : memref<1x512xf32, #tpu.memory_space<vmem>>, vector<1x512xf32>
    %4 = vector.broadcast %3 : vector<1x512xf32> to vector<8x512xf32>
    %5 = arith.addf %2, %4 : vector<8x512xf32>
    %cst_5 = arith.constant 0.000000e+00 : f32
    %6 = vector.broadcast %cst_5 : f32 to vector<8x512xf32>
    %7 = arith.maximumf %5, %6 : vector<8x512xf32>
    %c0_i32 = arith.constant 0 : i32
    %8 = arith.cmpi ne, %arg0, %c0_i32 : i32
    %9 = arith.extui %8 : i1 to i32
    %c0_i32_6 = arith.constant 0 : i32
    %10 = arith.cmpi ne, %9, %c0_i32_6 : i32
    scf.if %10 {
      %cst_9 = arith.constant dense<0.000000e+00> : vector<512xf32>
      %14 = vector.multi_reduction <add>, %7, %cst_9 [0] : vector<8x512xf32> to vector<512xf32>
      %15 = vector.shape_cast %14 : vector<512xf32> to vector<1x512xf32>
      %16 = arith.mulf %7, %7 : vector<8x512xf32>
      %cst_10 = arith.constant dense<0.000000e+00> : vector<512xf32>
      %17 = vector.multi_reduction <add>, %16, %cst_10 [0] : vector<8x512xf32> to vector<512xf32>
      %18 = vector.shape_cast %17 : vector<512xf32> to vector<1x512xf32>
      %19 = tpu.concatenate %15, %18 in 0 : vector<1x512xf32>, vector<1x512xf32> -> vector<2x512xf32>
      %20 = vector.shape_cast %19 : vector<2x512xf32> to vector<1x2x512xf32>
      %c0_11 = arith.constant 0 : index
      %c0_12 = arith.constant 0 : index
      %c0_13 = arith.constant 0 : index
      %21 = vector.load %arg5[%c0_11, %c0_12, %c0_13] : memref<1x2x512xf32, #tpu.memory_space<vmem>>, vector<1x2x512xf32>
      tpu.vector_store %arg5[%c0_11, %c0_12, %c0_13], %20 {strides = array<i32>} : memref<1x2x512xf32, #tpu.memory_space<vmem>>, vector<1x2x512xf32>,
    } else {
    }
    %c0_i32_7 = arith.constant 0 : i32
    %11 = arith.cmpi eq, %arg0, %c0_i32_7 : i32
    %12 = arith.extui %11 : i1 to i32
    %c0_i32_8 = arith.constant 0 : i32
    %13 = arith.cmpi ne, %12, %c0_i32_8 : i32
    scf.if %13 {
      %c8_i32 = arith.constant 8 : i32
      %14 = arith.muli %arg0, %c8_i32 : i32
      %15 = tpu.iota {dimensions = array<i32: 0>} : vector<8x512xi32>
      %16 = vector.broadcast %14 : i32 to vector<8x512xi32>
      %17 = arith.addi %16, %15 : vector<8x512xi32>
      %c0_9 = arith.constant 0 : index
      %18 = memref.load %arg1[%c0_9] : memref<1xi32, #tpu.memory_space<smem>>
      %19 = vector.broadcast %18 : i32 to vector<8x512xi32>
      %20 = arith.cmpi slt, %17, %19 : vector<8x512xi32>
      %cst_10 = arith.constant 0.000000e+00 : f32
      %21 = vector.broadcast %cst_10 : f32 to vector<8x512xf32>
      %22 = arith.select %20, %7, %21 : vector<8x512xi1>, vector<8x512xf32>
      %cst_11 = arith.constant dense<0.000000e+00> : vector<512xf32>
      %23 = vector.multi_reduction <add>, %22, %cst_11 [0] : vector<8x512xf32> to vector<512xf32>
      %24 = vector.shape_cast %23 : vector<512xf32> to vector<1x512xf32>
      %25 = arith.mulf %22, %22 : vector<8x512xf32>
      %cst_12 = arith.constant dense<0.000000e+00> : vector<512xf32>
      %26 = vector.multi_reduction <add>, %25, %cst_12 [0] : vector<8x512xf32> to vector<512xf32>
      %27 = vector.shape_cast %26 : vector<512xf32> to vector<1x512xf32>
      %28 = tpu.concatenate %24, %27 in 0 : vector<1x512xf32>, vector<1x512xf32> -> vector<2x512xf32>
      %29 = vector.shape_cast %28 : vector<2x512xf32> to vector<1x2x512xf32>
      %c0_13 = arith.constant 0 : index
      %c0_14 = arith.constant 0 : index
      %c0_15 = arith.constant 0 : index
      %30 = vector.load %arg5[%c0_13, %c0_14, %c0_15] : memref<1x2x512xf32, #tpu.memory_space<vmem>>, vector<1x2x512xf32>
      tpu.vector_store %arg5[%c0_13, %c0_14, %c0_15], %29 {strides = array<i32>} : memref<1x2x512xf32, #tpu.memory_space<vmem>>, vector<1x2x512xf32>,
    } else {
    }
    return
  }
  func.func @transform_0(%arg0: i32) -> i32 {
    %c0_i32 = arith.constant 0 : i32
    %c0_i32_0 = arith.constant 0 : i32
    return %c0_i32 : i32
  }
  func.func @transform_1(%arg0: i32) -> (i32, i32) {
    %c0_i32 = arith.constant 0 : i32
    %c0_i32_0 = arith.constant 0 : i32
    return %arg0, %c0_i32 : i32, i32
  }
  func.func @transform_2(%arg0: i32) -> (i32, i32) {
    %c0_i32 = arith.constant 0 : i32
    %c0_i32_0 = arith.constant 0 : i32
    %c0_i32_1 = arith.constant 0 : i32
    return %c0_i32, %c0_i32_0 : i32, i32
  }
  func.func @transform_3(%arg0: i32) -> (i32, i32) {
    %c0_i32 = arith.constant 0 : i32
    %c0_i32_0 = arith.constant 0 : i32
    %c0_i32_1 = arith.constant 0 : i32
    return %c0_i32, %c0_i32_0 : i32, i32
  }
  func.func @transform_4(%arg0: i32) -> (i32, i32, i32) {
    %c0_i32 = arith.constant 0 : i32
    %c0_i32_0 = arith.constant 0 : i32
    %c0_i32_1 = arith.constant 0 : i32
    return %arg0, %c0_i32, %c0_i32_0 : i32, i32, i32
  }
}

module attributes {stable_mosaic.version = 11 : i64} {
  func.func @_bn_fc2_fc3_kernel(%arg0: i32, %arg1: memref<1xf32, #tpu.memory_space<smem>>, %arg2: memref<8x128xf32, #tpu.memory_space<vmem>>, %arg3: memref<128x512xf32, #tpu.memory_space<vmem>>, %arg4: memref<1x512xf32, #tpu.memory_space<vmem>>, %arg5: memref<1x512xf32, #tpu.memory_space<vmem>>, %arg6: memref<1x512xf32, #tpu.memory_space<vmem>>, %arg7: memref<512x384xf32, #tpu.memory_space<vmem>>, %arg8: memref<128x384xf32, #tpu.memory_space<vmem>>, %arg9: memref<1x384xf32, #tpu.memory_space<vmem>>, %arg10: memref<8x384xf32, #tpu.memory_space<vmem>>, %arg11: memref<1x8xf32, #tpu.memory_space<vmem>>) attributes {dimension_semantics = [#tpu.dimension_semantics<parallel>], iteration_bounds = array<i64: 1>, scalar_prefetch = 0 : i64, scratch_operands = 0 : i64, tpu.core_type = #tpu.core_type<tc>, window_params = [{transform_indices = @transform_0, window_bounds = array<i64: 1>}, {transform_indices = @transform_1, window_bounds = array<i64: 8, 128>}, {pipeline_mode = #tpu.pipeline_mode<synchronous>, transform_indices = @transform_2, window_bounds = array<i64: 128, 512>}, {pipeline_mode = #tpu.pipeline_mode<synchronous>, transform_indices = @transform_3, window_bounds = array<i64: 1, 512>}, {pipeline_mode = #tpu.pipeline_mode<synchronous>, transform_indices = @transform_4, window_bounds = array<i64: 1, 512>}, {pipeline_mode = #tpu.pipeline_mode<synchronous>, transform_indices = @transform_5, window_bounds = array<i64: 1, 512>}, {pipeline_mode = #tpu.pipeline_mode<synchronous>, transform_indices = @transform_6, window_bounds = array<i64: 512, 384>}, {pipeline_mode = #tpu.pipeline_mode<synchronous>, transform_indices = @transform_7, window_bounds = array<i64: 128, 384>}, {pipeline_mode = #tpu.pipeline_mode<synchronous>, transform_indices = @transform_8, window_bounds = array<i64: 1, 384>}, {pipeline_mode = #tpu.pipeline_mode<synchronous>, transform_indices = @transform_9, window_bounds = array<i64: 8, 384>}, {transform_indices = @transform_10, window_bounds = array<i64: 1, 8>}]} {
    %c0 = arith.constant 0 : index
    %c0_0 = arith.constant 0 : index
    %0 = vector.load %arg2[%c0, %c0_0] : memref<8x128xf32, #tpu.memory_space<vmem>>, vector<8x128xf32>
    %c0_1 = arith.constant 0 : index
    %c0_2 = arith.constant 0 : index
    %1 = vector.load %arg3[%c0_1, %c0_2] : memref<128x512xf32, #tpu.memory_space<vmem>>, vector<128x512xf32>
    %cst = arith.constant dense<0.000000e+00> : vector<8x512xf32>
    %2 = tpu.matmul %0, %1, %cst {dimension_numbers = #tpu.dot_dimension_numbers<[1], [0], [0], [1], [0, 0, 1, 1], [], []>} : vector<8x128xf32>, vector<128x512xf32>, vector<8x512xf32> -> vector<8x512xf32>
    %c0_3 = arith.constant 0 : index
    %c0_4 = arith.constant 0 : index
    %3 = vector.load %arg4[%c0_3, %c0_4] : memref<1x512xf32, #tpu.memory_space<vmem>>, vector<1x512xf32>
    %4 = vector.broadcast %3 : vector<1x512xf32> to vector<8x512xf32>
    %5 = arith.addf %2, %4 : vector<8x512xf32>
    %cst_5 = arith.constant 0.000000e+00 : f32
    %6 = vector.broadcast %cst_5 : f32 to vector<8x512xf32>
    %7 = arith.maximumf %5, %6 : vector<8x512xf32>
    %c0_6 = arith.constant 0 : index
    %c0_7 = arith.constant 0 : index
    %8 = vector.load %arg5[%c0_6, %c0_7] : memref<1x512xf32, #tpu.memory_space<vmem>>, vector<1x512xf32>
    %9 = vector.broadcast %8 : vector<1x512xf32> to vector<8x512xf32>
    %10 = arith.mulf %7, %9 : vector<8x512xf32>
    %c0_8 = arith.constant 0 : index
    %c0_9 = arith.constant 0 : index
    %11 = vector.load %arg6[%c0_8, %c0_9] : memref<1x512xf32, #tpu.memory_space<vmem>>, vector<1x512xf32>
    %12 = vector.broadcast %11 : vector<1x512xf32> to vector<8x512xf32>
    %13 = arith.addf %10, %12 : vector<8x512xf32>
    %c0_10 = arith.constant 0 : index
    %c0_11 = arith.constant 0 : index
    %14 = vector.load %arg7[%c0_10, %c0_11] : memref<512x384xf32, #tpu.memory_space<vmem>>, vector<512x384xf32>
    %cst_12 = arith.constant dense<0.000000e+00> : vector<8x384xf32>
    %15 = tpu.matmul %13, %14, %cst_12 {dimension_numbers = #tpu.dot_dimension_numbers<[1], [0], [0], [1], [0, 0, 1, 1], [], []>} : vector<8x512xf32>, vector<512x384xf32>, vector<8x384xf32> -> vector<8x384xf32>
    %c0_13 = arith.constant 0 : index
    %c0_14 = arith.constant 0 : index
    %16 = vector.load %arg8[%c0_13, %c0_14] : memref<128x384xf32, #tpu.memory_space<vmem>>, vector<128x384xf32>
    %cst_15 = arith.constant dense<0.000000e+00> : vector<8x384xf32>
    %17 = tpu.matmul %0, %16, %cst_15 {dimension_numbers = #tpu.dot_dimension_numbers<[1], [0], [0], [1], [0, 0, 1, 1], [], []>} : vector<8x128xf32>, vector<128x384xf32>, vector<8x384xf32> -> vector<8x384xf32>
    %18 = arith.addf %15, %17 : vector<8x384xf32>
    %c0_16 = arith.constant 0 : index
    %c0_17 = arith.constant 0 : index
    %19 = vector.load %arg9[%c0_16, %c0_17] : memref<1x384xf32, #tpu.memory_space<vmem>>, vector<1x384xf32>
    %20 = vector.broadcast %19 : vector<1x384xf32> to vector<8x384xf32>
    %21 = arith.addf %18, %20 : vector<8x384xf32>
    %cst_18 = arith.constant 0.000000e+00 : f32
    %22 = vector.broadcast %cst_18 : f32 to vector<8x384xf32>
    %23 = arith.maximumf %21, %22 : vector<8x384xf32>
    %c0_19 = arith.constant 0 : index
    %c0_20 = arith.constant 0 : index
    %24 = vector.load %arg10[%c0_19, %c0_20] : memref<8x384xf32, #tpu.memory_space<vmem>>, vector<8x384xf32>
    %cst_21 = arith.constant dense<0.000000e+00> : vector<8x8xf32>
    %25 = tpu.matmul %24, %23, %cst_21 {dimension_numbers = #tpu.dot_dimension_numbers<[1], [1], [0], [0], [0, 0, 1, 0], [], []>} : vector<8x384xf32>, vector<8x384xf32>, vector<8x8xf32> -> vector<8x8xf32>
    %26 = vector.extract_strided_slice %25 {offsets = [0, 0], sizes = [1, 8], strides = [1, 1]} : vector<8x8xf32> to vector<1x8xf32>
    %c0_22 = arith.constant 0 : index
    %27 = memref.load %arg1[%c0_22] : memref<1xf32, #tpu.memory_space<smem>>
    %28 = vector.broadcast %27 : f32 to vector<1x8xf32>
    %29 = arith.addf %26, %28 : vector<1x8xf32>
    %c0_23 = arith.constant 0 : index
    %c0_24 = arith.constant 0 : index
    %30 = vector.load %arg11[%c0_23, %c0_24] : memref<1x8xf32, #tpu.memory_space<vmem>>, vector<1x8xf32>
    tpu.vector_store %arg11[%c0_23, %c0_24], %29 {strides = array<i32>} : memref<1x8xf32, #tpu.memory_space<vmem>>, vector<1x8xf32>,
    return
  }
  func.func @transform_0(%arg0: i32) -> i32 {
    %c0_i32 = arith.constant 0 : i32
    %c0_i32_0 = arith.constant 0 : i32
    return %c0_i32 : i32
  }
  func.func @transform_1(%arg0: i32) -> (i32, i32) {
    %c0_i32 = arith.constant 0 : i32
    %c0_i32_0 = arith.constant 0 : i32
    return %arg0, %c0_i32 : i32, i32
  }
  func.func @transform_2(%arg0: i32) -> (i32, i32) {
    %c0_i32 = arith.constant 0 : i32
    %c0_i32_0 = arith.constant 0 : i32
    %c0_i32_1 = arith.constant 0 : i32
    return %c0_i32, %c0_i32_0 : i32, i32
  }
  func.func @transform_3(%arg0: i32) -> (i32, i32) {
    %c0_i32 = arith.constant 0 : i32
    %c0_i32_0 = arith.constant 0 : i32
    %c0_i32_1 = arith.constant 0 : i32
    return %c0_i32, %c0_i32_0 : i32, i32
  }
  func.func @transform_4(%arg0: i32) -> (i32, i32) {
    %c0_i32 = arith.constant 0 : i32
    %c0_i32_0 = arith.constant 0 : i32
    %c0_i32_1 = arith.constant 0 : i32
    return %c0_i32, %c0_i32_0 : i32, i32
  }
  func.func @transform_5(%arg0: i32) -> (i32, i32) {
    %c0_i32 = arith.constant 0 : i32
    %c0_i32_0 = arith.constant 0 : i32
    %c0_i32_1 = arith.constant 0 : i32
    return %c0_i32, %c0_i32_0 : i32, i32
  }
  func.func @transform_6(%arg0: i32) -> (i32, i32) {
    %c0_i32 = arith.constant 0 : i32
    %c0_i32_0 = arith.constant 0 : i32
    %c0_i32_1 = arith.constant 0 : i32
    return %c0_i32, %c0_i32_0 : i32, i32
  }
  func.func @transform_7(%arg0: i32) -> (i32, i32) {
    %c0_i32 = arith.constant 0 : i32
    %c0_i32_0 = arith.constant 0 : i32
    %c0_i32_1 = arith.constant 0 : i32
    return %c0_i32, %c0_i32_0 : i32, i32
  }
  func.func @transform_8(%arg0: i32) -> (i32, i32) {
    %c0_i32 = arith.constant 0 : i32
    %c0_i32_0 = arith.constant 0 : i32
    %c0_i32_1 = arith.constant 0 : i32
    return %c0_i32, %c0_i32_0 : i32, i32
  }
  func.func @transform_9(%arg0: i32) -> (i32, i32) {
    %c0_i32 = arith.constant 0 : i32
    %c0_i32_0 = arith.constant 0 : i32
    %c0_i32_1 = arith.constant 0 : i32
    return %c0_i32, %c0_i32_0 : i32, i32
  }
  func.func @transform_10(%arg0: i32) -> (i32, i32) {
    %c0_i32 = arith.constant 0 : i32
    %c0_i32_0 = arith.constant 0 : i32
    return %c0_i32, %arg0 : i32, i32
  }
}

</mosaic_0001>

<bundles_post_ra>
// kernel: critic_forward.2
= control target key start
LH: loop header
LB: loop body
LE: loop exit
PB: predicated region body
PF: predicated region fallthrough
CT: control target
= control target key end

     0   :  { %10 = vsyncpa [#allocation4], 0  ;;  %s391_s18 = smov [#allocation3]   ;;  %s392_s20 = smov 512   ;;  %s450_s0 = inlined_call_operand.<no memory space> [shape: s32[1], index: 0, kind: input, shape index: {}]   ;;  %s451_s1 = inlined_call_operand.vmem [shape: f32[8,128], index: 1, kind: input, shape index: {}]   ;;  %s452_s2 = inlined_call_operand.hbm [shape: f32[128,512], index: 2, kind: input, shape index: {}]   ;;  %s453_s3 = inlined_call_operand.vmem [shape: f32[1,512], index: 3, kind: input, shape index: {}]   ;;  %s454_s4 = inlined_call_operand.vmem [shape: f32[1,2,512], index: 4, kind: output, shape index: {}]  }
   0x1   :  { %s19_s17 = sshll.u32 %s452_s2, 4  ;;  %s21_s19 = sshll.u32 %s391_s18, 4  ;;  %s20_s17 = int_to_ptr.hbm [resolvable:$true] %s19_s17  ;;  %s22_s19 = int_to_ptr.vmem [resolvable:$true] %s21_s19 }
   0x2   :  { %s393_s21 = smov 32  }
   0x3   :  { %27 = dma.hbm_to_vmem [thread:$0]  %s20_s17, 8192, %s22_s19, [#allocation4], %s392_s20, %s392_s20, %s393_s21  }
   0x4   :  { %389 = dma.done.wait [#allocation4], 8192  }
   0x5   :  { %390 = vsyncadd [#allocation4], 4294959104  ;;  %v95_v0 = vld [vmem:[#allocation3 + $0x1e0] sm:$0xff]  ;;  %v96_v1 = vld [vmem:[#allocation3 + $0x1e8] sm:$0xff]  ;;  %vm337_vm1 = vcmask 1040384   ;;  %vm349_vm2 = vcmask 1041408  }
   0x6   :  { %v97_v2 = vld [vmem:[#allocation3 + $0x1f0] sm:$0xff]  ;;  %109 = vmatpush.msra.mxu0 %v95_v0  ;;  %129 = vmatpush.msra.mxu1 %v96_v1  ;;  %v98_v3 = vld [vmem:[#allocation3 + $0x1f8] sm:$0xff]  ;;  %v91_v4 = vld [vmem:[#allocation3 + $0x1c0] sm:$0xff]  ;;  %vm351_vm3 = vcmask 1045508   ;;  %vm353_vm4 = vcmask 1043456  }
   0x7   :  { %v92_v5 = vld [vmem:[#allocation3 + $0x1c8] sm:$0xff]  ;;  %149 = vmatpush.msra.mxu2 %v97_v2  ;;  %169 = vmatpush.msra.mxu3 %v98_v3  ;;  %v93_v6 = vld [vmem:[#allocation3 + $0x1d0] sm:$0xff]  ;;  %v94_v7 = vld [vmem:[#allocation3 + $0x1d8] sm:$0xff]  ;;  %v274_v2 = vlaneseq }
   0x8   :  { %v87_v8 = vld [vmem:[#allocation3 + $0x1a0] sm:$0xff]  ;;  %110 = vmatpush.msra.mxu0 %v91_v4  ;;  %130 = vmatpush.msra.mxu1 %v92_v5  ;;  %v88_v9 = vld [vmem:[#allocation3 + $0x1a8] sm:$0xff]  ;;  %v89_v10 = vld [vmem:[#allocation3 + $0x1b0] sm:$0xff] }
   0x9   :  { %v90_v11 = vld [vmem:[#allocation3 + $0x1b8] sm:$0xff]  ;;  %150 = vmatpush.msra.mxu2 %v93_v6  ;;  %170 = vmatpush.msra.mxu3 %v94_v7  ;;  %v83_v12 = vld [vmem:[#allocation3 + $0x180] sm:$0xff]  ;;  %v84_v13 = vld [vmem:[#allocation3 + $0x188] sm:$0xff]  ;;  %v275_v5 = vshrl.u32 %v274_v2, 7  ;;  %v279_v6 = vstv %s450_s0 }
   0xa   :  { %111 = vmatpush.msra.mxu0 %v87_v8  ;;  %131 = vmatpush.msra.mxu1 %v88_v9  ;;  %v85_v14 = vld [vmem:[#allocation3 + $0x190] sm:$0xff]  ;;  %v86_v15 = vld [vmem:[#allocation3 + $0x198] sm:$0xff]  ;;  %v79_v16 = vld [vmem:[#allocation3 + $0x160] sm:$0xff] }
   0xb   :  { %151 = vmatpush.msra.mxu2 %v89_v10  ;;  %171 = vmatpush.msra.mxu3 %v90_v11  ;;  %v80_v17 = vld [vmem:[#allocation3 + $0x168] sm:$0xff]  ;;  %v81_v18 = vld [vmem:[#allocation3 + $0x170] sm:$0xff]  ;;  %v82_v19 = vld [vmem:[#allocation3 + $0x178] sm:$0xff]  ;;  %vm431_vm0 = vcmp.lt.s32.totalorder %v275_v5, %v279_v6 }
   0xc   :  { %112 = vmatpush.msra.mxu0 %v83_v12  ;;  %132 = vmatpush.msra.mxu1 %v84_v13  ;;  %v75_v20 = vld [vmem:[#allocation3 + $0x140] sm:$0xff]  ;;  %v76_v21 = vld [vmem:[#allocation3 + $0x148] sm:$0xff]  ;;  %v77_v22 = vld [vmem:[#allocation3 + $0x150] sm:$0xff] }
   0xd   :  { %152 = vmatpush.msra.mxu2 %v85_v14  ;;  %172 = vmatpush.msra.mxu3 %v86_v15  ;;  %v78_v23 = vld [vmem:[#allocation3 + $0x158] sm:$0xff]  ;;  %v71_v24 = vld [vmem:[#allocation3 + $0x120] sm:$0xff]  ;;  %v72_v25 = vld [vmem:[#allocation3 + $0x128] sm:$0xff] }
   0xe   :  { %113 = vmatpush.msra.mxu0 %v79_v16  ;;  %133 = vmatpush.msra.mxu1 %v80_v17  ;;  %v73_v26 = vld [vmem:[#allocation3 + $0x130] sm:$0xff]  ;;  %v74_v27 = vld [vmem:[#allocation3 + $0x138] sm:$0xff]  ;;  %v67_v28 = vld [vmem:[#allocation3 + $0x100] sm:$0xff] }
   0xf   :  { %153 = vmatpush.msra.mxu2 %v81_v18  ;;  %173 = vmatpush.msra.mxu3 %v82_v19  ;;  %v68_v29 = vld [vmem:[#allocation3 + $0x108] sm:$0xff]  ;;  %v69_v30 = vld [vmem:[#allocation3 + $0x110] sm:$0xff]  ;;  %v70_v31 = vld [vmem:[#allocation3 + $0x118] sm:$0xff] }
  0x10   :  { %114 = vmatpush.msra.mxu0 %v75_v20  ;;  %134 = vmatpush.msra.mxu1 %v76_v21  ;;  %v63_v32 = vld [vmem:[#allocation3 + $0xe0] sm:$0xff]  ;;  %v64_v33 = vld [vmem:[#allocation3 + $0xe8] sm:$0xff]  ;;  %v65_v34 = vld [vmem:[#allocation3 + $0xf0] sm:$0xff] }
  0x11   :  { %154 = vmatpush.msra.mxu2 %v77_v22  ;;  %174 = vmatpush.msra.mxu3 %v78_v23  ;;  %v66_v35 = vld [vmem:[#allocation3 + $0xf8] sm:$0xff]  ;;  %v59_v36 = vld [vmem:[#allocation3 + $0xc0] sm:$0xff]  ;;  %v60_v37 = vld [vmem:[#allocation3 + $0xc8] sm:$0xff] }
  0x12   :  { %115 = vmatpush.msra.mxu0 %v71_v24  ;;  %135 = vmatpush.msra.mxu1 %v72_v25  ;;  %v61_v38 = vld [vmem:[#allocation3 + $0xd0] sm:$0xff]  ;;  %v62_v39 = vld [vmem:[#allocation3 + $0xd8] sm:$0xff]  ;;  %v55_v40 = vld [vmem:[#allocation3 + $0xa0] sm:$0xff] }
  0x13   :  { %155 = vmatpush.msra.mxu2 %v73_v26  ;;  %175 = vmatpush.msra.mxu3 %v74_v27  ;;  %v56_v41 = vld [vmem:[#allocation3 + $0xa8] sm:$0xff]  ;;  %v57_v42 = vld [vmem:[#allocation3 + $0xb0] sm:$0xff]  ;;  %v58_v43 = vld [vmem:[#allocation3 + $0xb8] sm:$0xff] }
  0x14   :  { %116 = vmatpush.msra.mxu0 %v67_v28  ;;  %136 = vmatpush.msra.mxu1 %v68_v29  ;;  %v51_v44 = vld [vmem:[#allocation3 + $0x80] sm:$0xff]  ;;  %v52_v45 = vld [vmem:[#allocation3 + $0x88] sm:$0xff]  ;;  %v53_v46 = vld [vmem:[#allocation3 + $0x90] sm:$0xff] }
  0x15   :  { %156 = vmatpush.msra.mxu2 %v69_v30  ;;  %176 = vmatpush.msra.mxu3 %v70_v31  ;;  %v54_v47 = vld [vmem:[#allocation3 + $0x98] sm:$0xff]  ;;  %v47_v48 = vld [vmem:[#allocation3 + $0x60] sm:$0xff]  ;;  %v48_v49 = vld [vmem:[#allocation3 + $0x68] sm:$0xff] }
  0x16   :  { %117 = vmatpush.msra.mxu0 %v63_v32  ;;  %137 = vmatpush.msra.mxu1 %v64_v33  ;;  %v49_v50 = vld [vmem:[#allocation3 + $0x70] sm:$0xff]  ;;  %v50_v51 = vld [vmem:[#allocation3 + $0x78] sm:$0xff]  ;;  %v43_v52 = vld [vmem:[#allocation3 + $0x40] sm:$0xff] }
  0x17   :  { %157 = vmatpush.msra.mxu2 %v65_v34  ;;  %177 = vmatpush.msra.mxu3 %v66_v35  ;;  %v44_v53 = vld [vmem:[#allocation3 + $0x48] sm:$0xff]  ;;  %v45_v54 = vld [vmem:[#allocation3 + $0x50] sm:$0xff]  ;;  %v46_v55 = vld [vmem:[#allocation3 + $0x58] sm:$0xff] }
  0x18   :  { %118 = vmatpush.msra.mxu0 %v59_v36  ;;  %138 = vmatpush.msra.mxu1 %v60_v37  ;;  %v39_v56 = vld [vmem:[#allocation3 + $0x20] sm:$0xff]  ;;  %v40_v57 = vld [vmem:[#allocation3 + $0x28] sm:$0xff]  ;;  %v41_v58 = vld [vmem:[#allocation3 + $0x30] sm:$0xff] }
  0x19   :  { %158 = vmatpush.msra.mxu2 %v61_v38  ;;  %178 = vmatpush.msra.mxu3 %v62_v39  ;;  %v42_v59 = vld [vmem:[#allocation3 + $0x38] sm:$0xff]  ;;  %v35_v60 = vld [vmem:[#allocation3] sm:$0xff]  ;;  %v36_v61 = vld [vmem:[#allocation3 + $0x8] sm:$0xff] }
  0x1a   :  { %119 = vmatpush.msra.mxu0 %v55_v40  ;;  %139 = vmatpush.msra.mxu1 %v56_v41  ;;  %v37_v62 = vld [vmem:[#allocation3 + $0x10] sm:$0xff]  ;;  %v38_v63 = vld [vmem:[#allocation3 + $0x18] sm:$0xff]  ;;  %v34_v0 = vld [vmem:[%s451_s1] sm:$0xff] }
  0x1b   :  { %159 = vmatpush.msra.mxu2 %v57_v42  ;;  %179 = vmatpush.msra.mxu3 %v58_v43  ;;  %v99_v1 = vld [vmem:[%s453_s3] sm:$0xf] }
  0x1c   :  { %120 = vmatpush.msra.mxu0 %v51_v44  ;;  %140 = vmatpush.msra.mxu1 %v52_v45  ;;  %v101_v3 = vperm.slane %v99_v1, 0  ;;  %v102_v4 = vperm.slane %v99_v1, 1  ;;  %v103_v16 = vperm.slane %v99_v1, 2  ;;  %v104_v17 = vperm.slane %v99_v1, 3 }
  0x1d   :  { %160 = vmatpush.msra.mxu2 %v53_v46  ;;  %180 = vmatpush.msra.mxu3 %v54_v47 }
  0x1e   :  { %121 = vmatpush.msra.mxu0 %v47_v48  ;;  %141 = vmatpush.msra.mxu1 %v48_v49 }
  0x1f   :  { %161 = vmatpush.msra.mxu2 %v49_v50  ;;  %181 = vmatpush.msra.mxu3 %v50_v51 }
  0x20   :  { %122 = vmatpush.msra.mxu0 %v43_v52  ;;  %142 = vmatpush.msra.mxu1 %v44_v53 }
  0x21   :  { %162 = vmatpush.msra.mxu2 %v45_v54  ;;  %182 = vmatpush.msra.mxu3 %v46_v55 }
  0x22   :  { %123 = vmatpush.msra.mxu0 %v39_v56  ;;  %143 = vmatpush.msra.mxu1 %v40_v57 }
  0x23   :  { %163 = vmatpush.msra.mxu2 %v41_v58  ;;  %183 = vmatpush.msra.mxu3 %v42_v59 }
  0x24   :  { %124 = vmatpush.msra.mxu0 %v35_v60  ;;  %144 = vmatpush.msra.mxu1 %v36_v61 }
  0x25   :  { %164 = vmatpush.msra.mxu2 %v37_v62  ;;  %184 = vmatpush.msra.mxu3 %v38_v63 }
  0x26   :  { %125 = vmatmul.f32.vlgmr.msra.gmra.mxu0 %v34_v0  ;;  %145 = vmatmul.f32.vlgmr.msra.gmra.mxu1 %v34_v0 }
  0x27   :  { %165 = vmatmul.f32.vlgmr.msra.gmra.mxu2 %v34_v0  ;;  %185 = vmatmul.f32.vlgmr.msra.gmra.mxu3 %v34_v0 }
  0xa3   :  { %v126_v7 = vpop.f32.mrf.mxu0  ;;  %v146_v8 = vpop.f32.mrf.mxu1 }
  0xa4   :  { %v127_v9 = vadd.f32 %v126_v7, %v101_v3  ;;  %v147_v10 = vadd.f32 %v146_v8, %v102_v4 }
  0xa6   :  { %v189_v12 = vmax.f32 %v127_v9, 0.0  ;;  %v190_v13 = vmax.f32 %v147_v10, 0.0 }
  0xa8   :  { %v281_v14 = vsel %vm431_vm0, %v189_v12, 0.0  ;;  %v282_v15 = vsel %vm431_vm0, %v190_v13, 0.0 }
  0xa9   :  { %v285_v18 = vrot.slane %v281_v14, 4  ;;  %v309_v19 = vmul.f32 %v281_v14, %v281_v14  ;;  %v291_v20 = vrot.slane %v282_v15, 4  ;;  %v310_v21 = vmul.f32 %v282_v15, %v282_v15 }
  0xaa   :  { %v166_v22 = vpop.f32.mrf.mxu2  ;;  %v186_v23 = vpop.f32.mrf.mxu3 }
  0xab   :  { %v313_v24 = vrot.slane %v309_v19, 4  ;;  %v292_v25 = vadd.f32 %v291_v20, %v282_v15  ;;  %v319_v26 = vrot.slane %v310_v21, 4  ;;  %v167_v27 = vadd.f32 %v166_v22, %v103_v16 }
  0xac   :  { %v187_v28 = vadd.f32 %v186_v23, %v104_v17  ;;  %v286_v29 = vadd.f32 %v285_v18, %v281_v14 }
  0xad   :  { %v320_v30 = vadd.f32 %v319_v26, %v310_v21  ;;  %v191_v31 = vmax.f32 %v167_v27, 0.0  ;;  %v314_v33 = vadd.f32 %v313_v24, %v309_v19  ;;  %v293_v34 = vrot.slane %v292_v25, 2 }
  0xae   :  { %v192_v32 = vmax.f32 %v187_v28, 0.0  ;;  %v287_v38 = vrot.slane %v286_v29, 2 }
  0xaf   :  { %v321_v35 = vrot.slane %v320_v30, 2  ;;  %v283_v36 = vsel %vm431_vm0, %v191_v31, 0.0  ;;  %v315_v44 = vrot.slane %v314_v33, 2  ;;  %v294_v45 = vadd.f32 %v293_v34, %v292_v25 }
  0xb0   :  { %v284_v37 = vsel %vm431_vm0, %v192_v32, 0.0  ;;  %v297_v40 = vrot.slane %v283_v36, 4  ;;  %v311_v41 = vmul.f32 %v283_v36, %v283_v36  ;;  %v288_v50 = vadd.f32 %v287_v38, %v286_v29 }
  0xb1   :  { %v322_v39 = vadd.f32 %v321_v35, %v320_v30  ;;  %v303_v42 = vrot.slane %v284_v37, 4  ;;  %v312_v43 = vmul.f32 %v284_v37, %v284_v37  ;;  %v316_v56 = vadd.f32 %v315_v44, %v314_v33 }
  0xb2   :  { %v298_v46 = vadd.f32 %v297_v40, %v283_v36  ;;  %v325_v47 = vrot.slane %v311_v41, 4  ;;  %v295_v57 = vrot.slane %v294_v45, 1  ;;  %v289_v63 = vrot.slane %v288_v50, 1 }
  0xb3   :  { %v304_v48 = vadd.f32 %v303_v42, %v284_v37  ;;  %v331_v49 = vrot.slane %v312_v43, 4  ;;  %v323_v51 = vrot.slane %v322_v39, 1  ;;  %v317_v2 = vrot.slane %v316_v56, 1 }
  0xb4   :  { %v299_v52 = vrot.slane %v298_v46, 2  ;;  %v326_v53 = vadd.f32 %v325_v47, %v311_v41  ;;  %v296_v3 = vadd.f32 %v295_v57, %v294_v45  ;;  %v290_v11 = vadd.f32 %v289_v63, %v288_v50 }
  0xb5   :  { %v305_v54 = vrot.slane %v304_v48, 2  ;;  %v332_v55 = vadd.f32 %v331_v49, %v312_v43  ;;  %v324_v61 = vadd.f32 %v323_v51, %v322_v39  ;;  %v318_v12 = vadd.f32 %v317_v2, %v316_v56 }
  0xb6   :  { %v300_v58 = vadd.f32 %v299_v52, %v298_v46  ;;  %v327_v59 = vrot.slane %v326_v53, 2 }
  0xb7   :  { %v306_v60 = vadd.f32 %v305_v54, %v304_v48  ;;  %v333_v62 = vrot.slane %v332_v55, 2  ;;  %v339_v7 = vsel %vm337_vm1, %v296_v3, %v324_v61  ;;  %v338_v20 = vsel %vm337_vm1, %v290_v11, %v318_v12 }
  0xb8   :  { %v301_v0 = vrot.slane %v300_v58, 1  ;;  %v328_v1 = vadd.f32 %v327_v59, %v326_v53  ;;  %v346_v15 = vrot.slane %v339_v7, 6 }
  0xb9   :  { %v307_v4 = vrot.slane %v306_v60, 1  ;;  %v334_v5 = vadd.f32 %v333_v62, %v332_v55 }
  0xba   :  { %v329_v6 = vrot.slane %v328_v1, 1  ;;  %v302_v9 = vadd.f32 %v301_v0, %v300_v58  ;;  %v350_v21 = vsel %vm349_vm2, %v338_v20, %v346_v15 }
  0xbb   :  { %v335_v8 = vrot.slane %v334_v5, 1  ;;  %v308_v13 = vadd.f32 %v307_v4, %v306_v60 }
  0xbc   :  { %v330_v10 = vadd.f32 %v329_v6, %v328_v1 }
  0xbd   :  { %v336_v14 = vadd.f32 %v335_v8, %v334_v5 }
  0xbe   :  { %v340_v16 = vsel %vm337_vm1, %v302_v9, %v330_v10 }
  0xbf   :  { %v347_v17 = vrot.slane %v340_v16, 4  ;;  %v341_v18 = vsel %vm337_vm1, %v308_v13, %v336_v14 }
  0xc0   :  { %v348_v19 = vrot.slane %v341_v18, 2 }
  0xc2   :  { %v352_v22 = vsel %vm351_vm3, %v347_v17, %v348_v19 }
  0xc3   :  { %v354_v23 = vsel %vm353_vm4, %v350_v21, %v352_v22 }
  0xc4   :  { %356 = vst [vmem:[%s454_s4] sm:$0xff] %v354_v23 }
  0xc5   :  { %361 = vsyncpa [#allocation4], 1 }

// kernel: critic_forward.3
= control target key start
LH: loop header
LB: loop body
LE: loop exit
PB: predicated region body
PF: predicated region fallthrough
CT: control target
= control target key end

     0   :  { %16 = vsyncpa [#allocation4], 0  ;;  %s1111_s0 = inlined_call_operand.<no memory space> [shape: f32[1], index: 0, kind: input, shape index: {}]   ;;  %s1112_s1 = inlined_call_operand.vmem [shape: f32[8,128], index: 1, kind: input, shape index: {}]   ;;  %s1113_s2 = inlined_call_operand.hbm [shape: f32[128,512], index: 2, kind: input, shape index: {}]   ;;  %s1114_s3 = inlined_call_operand.vmem [shape: f32[1,512], index: 3, kind: input, shape index: {}]   ;;  %s1115_s4 = inlined_call_operand.vmem [shape: f32[1,512], index: 4, kind: input, shape index: {}]   ;;  %s1116_s5 = inlined_call_operand.vmem [shape: f32[1,512], index: 5, kind: input, shape index: {}]   ;;  %s1117_s6 = inlined_call_operand.hbm [shape: f32[512,384], index: 6, kind: input, shape index: {}]   ;;  %s1118_s7 = inlined_call_operand.hbm [shape: f32[128,384], index: 7, kind: input, shape index: {}]   ;;  %s1119_s8 = inlined_call_operand.vmem [shape: f32[1,384], index: 8, kind: input, shape index: {}]   ;;  %s1120_s9 = inlined_call_operand.vmem [shape: f32[8,384], index: 9, kind: input, shape index: {}]   ;;  %s1121_s10 = inlined_call_operand.vmem [shape: f32[1,8], index: 10, kind: output, shape index: {}]  }
   0x1   :  { %17 = vsyncpa [#allocation6], 0  ;;  %s45_s15 = sshll.u32 %s1117_s6, 4  ;;  %s981_s16 = smov [#allocation5]   ;;  %s46_s15 = int_to_ptr.hbm [resolvable:$true] %s45_s15 }
   0x2   :  { %s47_s17 = sshll.u32 %s981_s16, 4  ;;  %s26_s20 = sshll.u32 %s1113_s2, 4  ;;  %s48_s17 = int_to_ptr.vmem [resolvable:$true] %s47_s17  ;;  %s27_s20 = int_to_ptr.hbm [resolvable:$true] %s26_s20 }
   0x3   :  { %s982_s21 = smov 384   ;;  %s983_s22 = smov 24  }
   0x4   :  { %53 = dma.hbm_to_vmem [thread:$0]  %s46_s15, 24576, %s48_s17, [#allocation6], %s982_s21, %s982_s21, %s983_s22  }
   0x5   :  { %s984_s23 = smov [#allocation3]   ;;  %s985_s25 = smov 512  }
   0x6   :  { %s28_s24 = sshll.u32 %s984_s23, 4  ;;  %s986_s26 = smov 32   ;;  %s29_s24 = int_to_ptr.vmem [resolvable:$true] %s28_s24 }
   0x7   :  { %34 = dma.hbm_to_vmem [thread:$0]  %s27_s20, 8192, %s29_s24, [#allocation4], %s985_s25, %s985_s25, %s986_s26  }
   0x8   :  { %s58_s28 = sshll.u32 %s1118_s7, 4  ;;  %s987_s29 = smov [#allocation7]   ;;  %s59_s28 = int_to_ptr.hbm [resolvable:$true] %s58_s28 }
   0x9   :  { %s60_s30 = sshll.u32 %s987_s29, 4  ;;  %s61_s30 = int_to_ptr.vmem [resolvable:$true] %s60_s30 }
   0xa   :  { %66 = dma.hbm_to_vmem [thread:$0]  %s59_s28, 6144, %s61_s30, [#allocation6], %s982_s21, %s982_s21, %s983_s22  }
   0xb   :  { %977 = dma.done.wait [#allocation4], 8192  }
   0xc   :  { %978 = vsyncadd [#allocation4], 4294959104 }
   0xd   :  { %979 = dma.done.wait [#allocation6], 30720  }
   0xe   :  { %980 = vsyncadd [#allocation6], 4294936576  ;;  %v144_v0 = vld [vmem:[#allocation3 + $0x1e0] sm:$0xff]  ;;  %v145_v1 = vld [vmem:[#allocation3 + $0x1e8] sm:$0xff]  ;;  %vm890_vm0 = vcmask 57344  }
   0xf   :  { %v146_v2 = vld [vmem:[#allocation3 + $0x1f0] sm:$0xff]  ;;  %158 = vmatpush.msra.mxu0 %v144_v0  ;;  %178 = vmatpush.msra.mxu1 %v145_v1  ;;  %v147_v3 = vld [vmem:[#allocation3 + $0x1f8] sm:$0xff]  ;;  %v140_v4 = vld [vmem:[#allocation3 + $0x1c0] sm:$0xff] }
  0x10   :  { %v141_v5 = vld [vmem:[#allocation3 + $0x1c8] sm:$0xff]  ;;  %198 = vmatpush.msra.mxu2 %v146_v2  ;;  %218 = vmatpush.msra.mxu3 %v147_v3  ;;  %v142_v6 = vld [vmem:[#allocation3 + $0x1d0] sm:$0xff]  ;;  %v143_v7 = vld [vmem:[#allocation3 + $0x1d8] sm:$0xff] }
  0x11   :  { %v136_v8 = vld [vmem:[#allocation3 + $0x1a0] sm:$0xff]  ;;  %159 = vmatpush.msra.mxu0 %v140_v4  ;;  %179 = vmatpush.msra.mxu1 %v141_v5  ;;  %v137_v9 = vld [vmem:[#allocation3 + $0x1a8] sm:$0xff]  ;;  %v138_v10 = vld [vmem:[#allocation3 + $0x1b0] sm:$0xff] }
  0x12   :  { %v139_v11 = vld [vmem:[#allocation3 + $0x1b8] sm:$0xff]  ;;  %199 = vmatpush.msra.mxu2 %v142_v6  ;;  %219 = vmatpush.msra.mxu3 %v143_v7  ;;  %v132_v12 = vld [vmem:[#allocation3 + $0x180] sm:$0xff]  ;;  %v133_v13 = vld [vmem:[#allocation3 + $0x188] sm:$0xff] }
  0x13   :  { %160 = vmatpush.msra.mxu0 %v136_v8  ;;  %180 = vmatpush.msra.mxu1 %v137_v9  ;;  %v134_v14 = vld [vmem:[#allocation3 + $0x190] sm:$0xff]  ;;  %v135_v15 = vld [vmem:[#allocation3 + $0x198] sm:$0xff]  ;;  %v128_v16 = vld [vmem:[#allocation3 + $0x160] sm:$0xff] }
  0x14   :  { %200 = vmatpush.msra.mxu2 %v138_v10  ;;  %220 = vmatpush.msra.mxu3 %v139_v11  ;;  %v129_v17 = vld [vmem:[#allocation3 + $0x168] sm:$0xff]  ;;  %v130_v18 = vld [vmem:[#allocation3 + $0x170] sm:$0xff]  ;;  %v131_v19 = vld [vmem:[#allocation3 + $0x178] sm:$0xff] }
  0x15   :  { %161 = vmatpush.msra.mxu0 %v132_v12  ;;  %181 = vmatpush.msra.mxu1 %v133_v13  ;;  %v124_v20 = vld [vmem:[#allocation3 + $0x140] sm:$0xff]  ;;  %v125_v21 = vld [vmem:[#allocation3 + $0x148] sm:$0xff]  ;;  %v126_v22 = vld [vmem:[#allocation3 + $0x150] sm:$0xff] }
  0x16   :  { %201 = vmatpush.msra.mxu2 %v134_v14  ;;  %221 = vmatpush.msra.mxu3 %v135_v15  ;;  %v127_v23 = vld [vmem:[#allocation3 + $0x158] sm:$0xff]  ;;  %v120_v24 = vld [vmem:[#allocation3 + $0x120] sm:$0xff]  ;;  %v121_v25 = vld [vmem:[#allocation3 + $0x128] sm:$0xff] }
  0x17   :  { %162 = vmatpush.msra.mxu0 %v128_v16  ;;  %182 = vmatpush.msra.mxu1 %v129_v17  ;;  %v122_v26 = vld [vmem:[#allocation3 + $0x130] sm:$0xff]  ;;  %v123_v27 = vld [vmem:[#allocation3 + $0x138] sm:$0xff]  ;;  %v116_v28 = vld [vmem:[#allocation3 + $0x100] sm:$0xff] }
  0x18   :  { %202 = vmatpush.msra.mxu2 %v130_v18  ;;  %222 = vmatpush.msra.mxu3 %v131_v19  ;;  %v117_v29 = vld [vmem:[#allocation3 + $0x108] sm:$0xff]  ;;  %v118_v30 = vld [vmem:[#allocation3 + $0x110] sm:$0xff]  ;;  %v119_v31 = vld [vmem:[#allocation3 + $0x118] sm:$0xff] }
  0x19   :  { %163 = vmatpush.msra.mxu0 %v124_v20  ;;  %183 = vmatpush.msra.mxu1 %v125_v21  ;;  %v112_v32 = vld [vmem:[#allocation3 + $0xe0] sm:$0xff]  ;;  %v113_v33 = vld [vmem:[#allocation3 + $0xe8] sm:$0xff]  ;;  %v114_v34 = vld [vmem:[#allocation3 + $0xf0] sm:$0xff] }
  0x1a   :  { %203 = vmatpush.msra.mxu2 %v126_v22  ;;  %223 = vmatpush.msra.mxu3 %v127_v23  ;;  %v115_v35 = vld [vmem:[#allocation3 + $0xf8] sm:$0xff]  ;;  %v108_v36 = vld [vmem:[#allocation3 + $0xc0] sm:$0xff]  ;;  %v109_v37 = vld [vmem:[#allocation3 + $0xc8] sm:$0xff] }
  0x1b   :  { %164 = vmatpush.msra.mxu0 %v120_v24  ;;  %184 = vmatpush.msra.mxu1 %v121_v25  ;;  %v110_v38 = vld [vmem:[#allocation3 + $0xd0] sm:$0xff]  ;;  %v111_v39 = vld [vmem:[#allocation3 + $0xd8] sm:$0xff]  ;;  %v104_v40 = vld [vmem:[#allocation3 + $0xa0] sm:$0xff] }
  0x1c   :  { %204 = vmatpush.msra.mxu2 %v122_v26  ;;  %224 = vmatpush.msra.mxu3 %v123_v27  ;;  %v105_v41 = vld [vmem:[#allocation3 + $0xa8] sm:$0xff]  ;;  %v106_v42 = vld [vmem:[#allocation3 + $0xb0] sm:$0xff]  ;;  %v107_v43 = vld [vmem:[#allocation3 + $0xb8] sm:$0xff] }
  0x1d   :  { %165 = vmatpush.msra.mxu0 %v116_v28  ;;  %185 = vmatpush.msra.mxu1 %v117_v29  ;;  %v100_v44 = vld [vmem:[#allocation3 + $0x80] sm:$0xff]  ;;  %v101_v45 = vld [vmem:[#allocation3 + $0x88] sm:$0xff]  ;;  %v102_v46 = vld [vmem:[#allocation3 + $0x90] sm:$0xff] }
  0x1e   :  { %205 = vmatpush.msra.mxu2 %v118_v30  ;;  %225 = vmatpush.msra.mxu3 %v119_v31  ;;  %v103_v47 = vld [vmem:[#allocation3 + $0x98] sm:$0xff]  ;;  %v96_v48 = vld [vmem:[#allocation3 + $0x60] sm:$0xff]  ;;  %v97_v49 = vld [vmem:[#allocation3 + $0x68] sm:$0xff] }
  0x1f   :  { %166 = vmatpush.msra.mxu0 %v112_v32  ;;  %186 = vmatpush.msra.mxu1 %v113_v33  ;;  %v98_v50 = vld [vmem:[#allocation3 + $0x70] sm:$0xff]  ;;  %v99_v51 = vld [vmem:[#allocation3 + $0x78] sm:$0xff]  ;;  %v92_v52 = vld [vmem:[#allocation3 + $0x40] sm:$0xff] }
  0x20   :  { %206 = vmatpush.msra.mxu2 %v114_v34  ;;  %226 = vmatpush.msra.mxu3 %v115_v35  ;;  %v93_v53 = vld [vmem:[#allocation3 + $0x48] sm:$0xff]  ;;  %v94_v54 = vld [vmem:[#allocation3 + $0x50] sm:$0xff]  ;;  %v95_v55 = vld [vmem:[#allocation3 + $0x58] sm:$0xff] }
  0x21   :  { %167 = vmatpush.msra.mxu0 %v108_v36  ;;  %187 = vmatpush.msra.mxu1 %v109_v37  ;;  %v88_v56 = vld [vmem:[#allocation3 + $0x20] sm:$0xff]  ;;  %v89_v57 = vld [vmem:[#allocation3 + $0x28] sm:$0xff]  ;;  %v90_v58 = vld [vmem:[#allocation3 + $0x30] sm:$0xff] }
  0x22   :  { %207 = vmatpush.msra.mxu2 %v110_v38  ;;  %227 = vmatpush.msra.mxu3 %v111_v39  ;;  %v91_v59 = vld [vmem:[#allocation3 + $0x38] sm:$0xff]  ;;  %v84_v60 = vld [vmem:[#allocation3] sm:$0xff]  ;;  %v85_v61 = vld [vmem:[#allocation3 + $0x8] sm:$0xff] }
  0x23   :  { %168 = vmatpush.msra.mxu0 %v104_v40  ;;  %188 = vmatpush.msra.mxu1 %v105_v41  ;;  %v86_v62 = vld [vmem:[#allocation3 + $0x10] sm:$0xff]  ;;  %v87_v63 = vld [vmem:[#allocation3 + $0x18] sm:$0xff]  ;;  %v1055_v0 = vld [vmem:[%s1112_s1] sm:$0xff] }
  0x24   :  { %208 = vmatpush.msra.mxu2 %v106_v42  ;;  %228 = vmatpush.msra.mxu3 %v107_v43  ;;  %v507_v1 = vld [vmem:[#allocation7 + $0x168] sm:$0xff]  ;;  %v508_v2 = vld [vmem:[#allocation7 + $0x170] sm:$0xff]  ;;  %v509_v3 = vld [vmem:[#allocation7 + $0x178] sm:$0xff] }
  0x25   :  { %169 = vmatpush.msra.mxu0 %v100_v44  ;;  %189 = vmatpush.msra.mxu1 %v101_v45  ;;  %v504_v4 = vld [vmem:[#allocation7 + $0x150] sm:$0xff]  ;;  %v505_v5 = vld [vmem:[#allocation7 + $0x158] sm:$0xff]  ;;  %v506_v6 = vld [vmem:[#allocation7 + $0x160] sm:$0xff] }
  0x26   :  { %209 = vmatpush.msra.mxu2 %v102_v46  ;;  %229 = vmatpush.msra.mxu3 %v103_v47  ;;  %v315_v7 = vld [vmem:[#allocation5 + $0x168] sm:$0xff]  ;;  %v501_v8 = vld [vmem:[#allocation7 + $0x138] sm:$0xff]  ;;  %v502_v9 = vld [vmem:[#allocation7 + $0x140] sm:$0xff] }
  0x27   :  { %170 = vmatpush.msra.mxu0 %v96_v48  ;;  %190 = vmatpush.msra.mxu1 %v97_v49  ;;  %v503_v10 = vld [vmem:[#allocation7 + $0x148] sm:$0xff]  ;;  %v312_v11 = vld [vmem:[#allocation5 + $0x150] sm:$0xff]  ;;  %v498_v12 = vld [vmem:[#allocation7 + $0x120] sm:$0xff] }
  0x28   :  { %210 = vmatpush.msra.mxu2 %v98_v50  ;;  %230 = vmatpush.msra.mxu3 %v99_v51  ;;  %v499_v13 = vld [vmem:[#allocation7 + $0x128] sm:$0xff]  ;;  %v309_v14 = vld [vmem:[#allocation5 + $0x138] sm:$0xff]  ;;  %v500_v15 = vld [vmem:[#allocation7 + $0x130] sm:$0xff] }
  0x29   :  { %171 = vmatpush.msra.mxu0 %v92_v52  ;;  %191 = vmatpush.msra.mxu1 %v93_v53  ;;  %v306_v16 = vld [vmem:[#allocation5 + $0x120] sm:$0xff]  ;;  %v495_v17 = vld [vmem:[#allocation7 + $0x108] sm:$0xff]  ;;  %v496_v18 = vld [vmem:[#allocation7 + $0x110] sm:$0xff] }
  0x2a   :  { %211 = vmatpush.msra.mxu2 %v94_v54  ;;  %231 = vmatpush.msra.mxu3 %v95_v55  ;;  %v497_v19 = vld [vmem:[#allocation7 + $0x118] sm:$0xff]  ;;  %v303_v20 = vld [vmem:[#allocation5 + $0x108] sm:$0xff]  ;;  %v492_v21 = vld [vmem:[#allocation7 + $0xf0] sm:$0xff] }
  0x2b   :  { %172 = vmatpush.msra.mxu0 %v88_v56  ;;  %192 = vmatpush.msra.mxu1 %v89_v57  ;;  %v493_v22 = vld [vmem:[#allocation7 + $0xf8] sm:$0xff]  ;;  %v494_v23 = vld [vmem:[#allocation7 + $0x100] sm:$0xff]  ;;  %v300_v24 = vld [vmem:[#allocation5 + $0xf0] sm:$0xff] }
  0x2c   :  { %212 = vmatpush.msra.mxu2 %v90_v58  ;;  %232 = vmatpush.msra.mxu3 %v91_v59  ;;  %v489_v25 = vld [vmem:[#allocation7 + $0xd8] sm:$0xff]  ;;  %v490_v26 = vld [vmem:[#allocation7 + $0xe0] sm:$0xff]  ;;  %v491_v27 = vld [vmem:[#allocation7 + $0xe8] sm:$0xff] }
  0x2d   :  { %173 = vmatpush.msra.mxu0 %v84_v60  ;;  %193 = vmatpush.msra.mxu1 %v85_v61  ;;  %v297_v28 = vld [vmem:[#allocation5 + $0xd8] sm:$0xff]  ;;  %v486_v29 = vld [vmem:[#allocation7 + $0xc0] sm:$0xff]  ;;  %v487_v30 = vld [vmem:[#allocation7 + $0xc8] sm:$0xff] }
  0x2e   :  { %213 = vmatpush.msra.mxu2 %v86_v62  ;;  %233 = vmatpush.msra.mxu3 %v87_v63  ;;  %v488_v31 = vld [vmem:[#allocation7 + $0xd0] sm:$0xff]  ;;  %v294_v32 = vld [vmem:[#allocation5 + $0xc0] sm:$0xff]  ;;  %v483_v33 = vld [vmem:[#allocation7 + $0xa8] sm:$0xff] }
  0x2f   :  { %174 = vmatmul.f32.vlgmr.msra.gmra.mxu0 %v1055_v0  ;;  %194 = vmatmul.f32.vlgmr.msra.gmra.mxu1 %v1055_v0  ;;  %v484_v34 = vld [vmem:[#allocation7 + $0xb0] sm:$0xff]  ;;  %v485_v35 = vld [vmem:[#allocation7 + $0xb8] sm:$0xff]  ;;  %v291_v36 = vld [vmem:[#allocation5 + $0xa8] sm:$0xff] }
  0x30   :  { %214 = vmatmul.f32.vlgmr.msra.gmra.mxu2 %v1055_v0  ;;  %234 = vmatmul.f32.vlgmr.msra.gmra.mxu3 %v1055_v0  ;;  %v480_v37 = vld [vmem:[#allocation7 + $0x90] sm:$0xff]  ;;  %v481_v38 = vld [vmem:[#allocation7 + $0x98] sm:$0xff]  ;;  %v482_v39 = vld [vmem:[#allocation7 + $0xa0] sm:$0xff] }
  0x31   :  { %510 = vmatpush.msrb.mxu0 %v507_v1  ;;  %530 = vmatpush.msrb.mxu1 %v508_v2  ;;  %v288_v40 = vld [vmem:[#allocation5 + $0x90] sm:$0xff]  ;;  %v477_v41 = vld [vmem:[#allocation7 + $0x78] sm:$0xff]  ;;  %v478_v42 = vld [vmem:[#allocation7 + $0x80] sm:$0xff] }
  0x32   :  { %550 = vmatpush.msrb.mxu2 %v509_v3  ;;  %570 = vmatpush.msrb.mxu3 %v315_v7  ;;  %v479_v43 = vld [vmem:[#allocation7 + $0x88] sm:$0xff]  ;;  %v285_v44 = vld [vmem:[#allocation5 + $0x78] sm:$0xff]  ;;  %v474_v45 = vld [vmem:[#allocation7 + $0x60] sm:$0xff] }
  0x33   :  { %511 = vmatpush.msrb.mxu0 %v504_v4  ;;  %531 = vmatpush.msrb.mxu1 %v505_v5  ;;  %v475_v46 = vld [vmem:[#allocation7 + $0x68] sm:$0xff]  ;;  %v476_v47 = vld [vmem:[#allocation7 + $0x70] sm:$0xff]  ;;  %v282_v48 = vld [vmem:[#allocation5 + $0x60] sm:$0xff] }
  0x34   :  { %551 = vmatpush.msrb.mxu2 %v506_v6  ;;  %571 = vmatpush.msrb.mxu3 %v312_v11  ;;  %v471_v49 = vld [vmem:[#allocation7 + $0x48] sm:$0xff]  ;;  %v472_v50 = vld [vmem:[#allocation7 + $0x50] sm:$0xff]  ;;  %v473_v51 = vld [vmem:[#allocation7 + $0x58] sm:$0xff] }
  0x35   :  { %512 = vmatpush.msrb.mxu0 %v501_v8  ;;  %532 = vmatpush.msrb.mxu1 %v502_v9  ;;  %v279_v52 = vld [vmem:[#allocation5 + $0x48] sm:$0xff]  ;;  %v468_v53 = vld [vmem:[#allocation7 + $0x30] sm:$0xff]  ;;  %v469_v54 = vld [vmem:[#allocation7 + $0x38] sm:$0xff] }
  0x36   :  { %552 = vmatpush.msrb.mxu2 %v503_v10  ;;  %572 = vmatpush.msrb.mxu3 %v309_v14  ;;  %v470_v55 = vld [vmem:[#allocation7 + $0x40] sm:$0xff]  ;;  %v276_v56 = vld [vmem:[#allocation5 + $0x30] sm:$0xff]  ;;  %v465_v57 = vld [vmem:[#allocation7 + $0x18] sm:$0xff] }
  0x37   :  { %513 = vmatpush.msrb.mxu0 %v498_v12  ;;  %533 = vmatpush.msrb.mxu1 %v499_v13  ;;  %v466_v58 = vld [vmem:[#allocation7 + $0x20] sm:$0xff]  ;;  %v467_v59 = vld [vmem:[#allocation7 + $0x28] sm:$0xff]  ;;  %v273_v60 = vld [vmem:[#allocation5 + $0x18] sm:$0xff] }
  0x38   :  { %553 = vmatpush.msrb.mxu2 %v500_v15  ;;  %573 = vmatpush.msrb.mxu3 %v306_v16  ;;  %v462_v61 = vld [vmem:[#allocation7] sm:$0xff]  ;;  %v463_v62 = vld [vmem:[#allocation7 + $0x8] sm:$0xff]  ;;  %v464_v1 = vld [vmem:[#allocation7 + $0x10] sm:$0xff] }
  0x39   :  { %514 = vmatpush.msrb.mxu0 %v495_v17  ;;  %534 = vmatpush.msrb.mxu1 %v496_v18  ;;  %v363_v63 = vld [vmem:[#allocation5 + $0x2e8] sm:$0xff]  ;;  %v360_v4 = vld [vmem:[#allocation5 + $0x2d0] sm:$0xff]  ;;  %v270_v5 = vld [vmem:[#allocation5] sm:$0xff] }
  0x3a   :  { %554 = vmatpush.msrb.mxu2 %v497_v19  ;;  %574 = vmatpush.msrb.mxu3 %v303_v20  ;;  %v411_v2 = vld [vmem:[#allocation5 + $0x468] sm:$0xff]  ;;  %v408_v6 = vld [vmem:[#allocation5 + $0x450] sm:$0xff]  ;;  %v357_v8 = vld [vmem:[#allocation5 + $0x2b8] sm:$0xff] }
  0x3b   :  { %515 = vmatpush.msrb.mxu0 %v492_v21  ;;  %535 = vmatpush.msrb.mxu1 %v493_v22  ;;  %v459_v3 = vld [vmem:[#allocation5 + $0x5e8] sm:$0xff]  ;;  %v456_v7 = vld [vmem:[#allocation5 + $0x5d0] sm:$0xff]  ;;  %v405_v10 = vld [vmem:[#allocation5 + $0x438] sm:$0xff] }
  0x3c   :  { %555 = vmatpush.msrb.mxu2 %v494_v23  ;;  %575 = vmatpush.msrb.mxu3 %v300_v24  ;;  %v316_v9 = vld [vmem:[#allocation5 + $0x170] sm:$0xff]  ;;  %v453_v11 = vld [vmem:[#allocation5 + $0x5b8] sm:$0xff]  ;;  %v354_v12 = vld [vmem:[#allocation5 + $0x2a0] sm:$0xff] }
  0x3d   :  { %516 = vmatpush.msrb.mxu0 %v489_v25  ;;  %536 = vmatpush.msrb.mxu1 %v490_v26  ;;  %v313_v13 = vld [vmem:[#allocation5 + $0x158] sm:$0xff]  ;;  %v402_v14 = vld [vmem:[#allocation5 + $0x420] sm:$0xff]  ;;  %v351_v16 = vld [vmem:[#allocation5 + $0x288] sm:$0xff] }
  0x3e   :  { %556 = vmatpush.msrb.mxu2 %v491_v27  ;;  %576 = vmatpush.msrb.mxu3 %v297_v28  ;;  %v450_v15 = vld [vmem:[#allocation5 + $0x5a0] sm:$0xff]  ;;  %v399_v18 = vld [vmem:[#allocation5 + $0x408] sm:$0xff]  ;;  %v348_v20 = vld [vmem:[#allocation5 + $0x270] sm:$0xff] }
  0x3f   :  { %517 = vmatpush.msrb.mxu0 %v486_v29  ;;  %537 = vmatpush.msrb.mxu1 %v487_v30  ;;  %v310_v17 = vld [vmem:[#allocation5 + $0x140] sm:$0xff]  ;;  %v447_v19 = vld [vmem:[#allocation5 + $0x588] sm:$0xff]  ;;  %v396_v21 = vld [vmem:[#allocation5 + $0x3f0] sm:$0xff] }
  0x40   :  { %557 = vmatpush.msrb.mxu2 %v488_v31  ;;  %577 = vmatpush.msrb.mxu3 %v294_v32  ;;  %v444_v22 = vld [vmem:[#allocation5 + $0x570] sm:$0xff]  ;;  %v345_v23 = vld [vmem:[#allocation5 + $0x258] sm:$0xff]  ;;  %v342_v26 = vld [vmem:[#allocation5 + $0x240] sm:$0xff] }
  0x41   :  { %518 = vmatpush.msrb.mxu0 %v483_v33  ;;  %538 = vmatpush.msrb.mxu1 %v484_v34  ;;  %v393_v24 = vld [vmem:[#allocation5 + $0x3d8] sm:$0xff]  ;;  %v307_v27 = vld [vmem:[#allocation5 + $0x128] sm:$0xff]  ;;  %v390_v28 = vld [vmem:[#allocation5 + $0x3c0] sm:$0xff] }
  0x42   :  { %558 = vmatpush.msrb.mxu2 %v485_v35  ;;  %578 = vmatpush.msrb.mxu3 %v291_v36  ;;  %v441_v25 = vld [vmem:[#allocation5 + $0x558] sm:$0xff]  ;;  %v438_v29 = vld [vmem:[#allocation5 + $0x540] sm:$0xff]  ;;  %v339_v30 = vld [vmem:[#allocation5 + $0x228] sm:$0xff] }
  0x43   :  { %519 = vmatpush.msrb.mxu0 %v480_v37  ;;  %539 = vmatpush.msrb.mxu1 %v481_v38  ;;  %v304_v31 = vld [vmem:[#allocation5 + $0x110] sm:$0xff]  ;;  %v387_v32 = vld [vmem:[#allocation5 + $0x3a8] sm:$0xff]  ;;  %v301_v35 = vld [vmem:[#allocation5 + $0xf8] sm:$0xff] }
  0x44   :  { %559 = vmatpush.msrb.mxu2 %v482_v39  ;;  %579 = vmatpush.msrb.mxu3 %v288_v40  ;;  %v435_v33 = vld [vmem:[#allocation5 + $0x528] sm:$0xff]  ;;  %v336_v34 = vld [vmem:[#allocation5 + $0x210] sm:$0xff]  ;;  %v333_v38 = vld [vmem:[#allocation5 + $0x1f8] sm:$0xff] }
  0x45   :  { %520 = vmatpush.msrb.mxu0 %v477_v41  ;;  %540 = vmatpush.msrb.mxu1 %v478_v42  ;;  %v384_v36 = vld [vmem:[#allocation5 + $0x390] sm:$0xff]  ;;  %v298_v39 = vld [vmem:[#allocation5 + $0xe0] sm:$0xff]  ;;  %v381_v40 = vld [vmem:[#allocation5 + $0x378] sm:$0xff] }
  0x46   :  { %560 = vmatpush.msrb.mxu2 %v479_v43  ;;  %580 = vmatpush.msrb.mxu3 %v285_v44  ;;  %v432_v37 = vld [vmem:[#allocation5 + $0x510] sm:$0xff]  ;;  %v429_v41 = vld [vmem:[#allocation5 + $0x4f8] sm:$0xff]  ;;  %v330_v42 = vld [vmem:[#allocation5 + $0x1e0] sm:$0xff] }
  0x47   :  { %521 = vmatpush.msrb.mxu0 %v474_v45  ;;  %541 = vmatpush.msrb.mxu1 %v475_v46  ;;  %v295_v43 = vld [vmem:[#allocation5 + $0xc8] sm:$0xff]  ;;  %v378_v44 = vld [vmem:[#allocation5 + $0x360] sm:$0xff] }
  0x48   :  { %561 = vmatpush.msrb.mxu2 %v476_v47  ;;  %581 = vmatpush.msrb.mxu3 %v282_v48  ;;  %v426_v45 = vld [vmem:[#allocation5 + $0x4e0] sm:$0xff]  ;;  %v327_v46 = vld [vmem:[#allocation5 + $0x1c8] sm:$0xff]  ;;  %v292_v47 = vld [vmem:[#allocation5 + $0xb0] sm:$0xff] }
  0x49   :  { %522 = vmatpush.msrb.mxu0 %v471_v49  ;;  %542 = vmatpush.msrb.mxu1 %v472_v50  ;;  %v375_v48 = vld [vmem:[#allocation5 + $0x348] sm:$0xff]  ;;  %v324_v50 = vld [vmem:[#allocation5 + $0x1b0] sm:$0xff] }
  0x4a   :  { %562 = vmatpush.msrb.mxu2 %v473_v51  ;;  %582 = vmatpush.msrb.mxu3 %v279_v52  ;;  %v423_v49 = vld [vmem:[#allocation5 + $0x4c8] sm:$0xff]  ;;  %v289_v51 = vld [vmem:[#allocation5 + $0x98] sm:$0xff]  ;;  %v372_v52 = vld [vmem:[#allocation5 + $0x330] sm:$0xff] }
  0x4b   :  { %523 = vmatpush.msrb.mxu0 %v468_v53  ;;  %543 = vmatpush.msrb.mxu1 %v469_v54  ;;  %v321_v53 = vld [vmem:[#allocation5 + $0x198] sm:$0xff]  ;;  %v420_v54 = vld [vmem:[#allocation5 + $0x4b0] sm:$0xff] }
  0x4c   :  { %563 = vmatpush.msrb.mxu2 %v470_v55  ;;  %583 = vmatpush.msrb.mxu3 %v276_v56  ;;  %v369_v55 = vld [vmem:[#allocation5 + $0x318] sm:$0xff]  ;;  %v286_v56 = vld [vmem:[#allocation5 + $0x80] sm:$0xff] }
  0x4d   :  { %524 = vmatpush.msrb.mxu0 %v465_v57  ;;  %544 = vmatpush.msrb.mxu1 %v466_v58  ;;  %v318_v57 = vld [vmem:[#allocation5 + $0x180] sm:$0xff]  ;;  %v417_v58 = vld [vmem:[#allocation5 + $0x498] sm:$0xff] }
  0x4e   :  { %564 = vmatpush.msrb.mxu2 %v467_v59  ;;  %584 = vmatpush.msrb.mxu3 %v273_v60  ;;  %v364_v59 = vld [vmem:[#allocation5 + $0x2f0] sm:$0xff]  ;;  %v366_v60 = vld [vmem:[#allocation5 + $0x300] sm:$0xff] }
  0x4f   :  { %525 = vmatpush.msrb.mxu0 %v462_v61  ;;  %545 = vmatpush.msrb.mxu1 %v463_v62  ;;  %v414_v61 = vld [vmem:[#allocation5 + $0x480] sm:$0xff]  ;;  %v412_v62 = vld [vmem:[#allocation5 + $0x470] sm:$0xff] }
  0x50   :  { %565 = vmatpush.msrb.mxu2 %v464_v1  ;;  %585 = vmatpush.msrb.mxu3 %v270_v5  ;;  %v460_v1 = vld [vmem:[#allocation5 + $0x5f0] sm:$0xff]  ;;  %v355_v5 = vld [vmem:[#allocation5 + $0x2a8] sm:$0xff] }
  0x51   :  { %590 = vmatpush.msra.mxu0 %v363_v63  ;;  %610 = vmatpush.msra.mxu1 %v411_v2  ;;  %v361_v63 = vld [vmem:[#allocation5 + $0x2d8] sm:$0xff] }
  0x52   :  { %630 = vmatpush.msra.mxu2 %v459_v3  ;;  %650 = vmatpush.msra.mxu3 %v316_v9  ;;  %v409_v2 = vld [vmem:[#allocation5 + $0x458] sm:$0xff]  ;;  %v358_v3 = vld [vmem:[#allocation5 + $0x2c0] sm:$0xff]  ;;  %v451_v9 = vld [vmem:[#allocation5 + $0x5a8] sm:$0xff] }
  0x53   :  { %591 = vmatpush.msra.mxu0 %v360_v4  ;;  %611 = vmatpush.msra.mxu1 %v408_v6  ;;  %v406_v4 = vld [vmem:[#allocation5 + $0x440] sm:$0xff] }
  0x54   :  { %631 = vmatpush.msra.mxu2 %v456_v7  ;;  %651 = vmatpush.msra.mxu3 %v313_v13  ;;  %v454_v6 = vld [vmem:[#allocation5 + $0x5c0] sm:$0xff]  ;;  %v403_v7 = vld [vmem:[#allocation5 + $0x428] sm:$0xff]  ;;  %v397_v13 = vld [vmem:[#allocation5 + $0x3f8] sm:$0xff] }
  0x55   :  { %592 = vmatpush.msra.mxu0 %v357_v8  ;;  %612 = vmatpush.msra.mxu1 %v405_v10  ;;  %v352_v8 = vld [vmem:[#allocation5 + $0x290] sm:$0xff] }
  0x56   :  { %632 = vmatpush.msra.mxu2 %v453_v11  ;;  %652 = vmatpush.msra.mxu3 %v310_v17  ;;  %v400_v10 = vld [vmem:[#allocation5 + $0x410] sm:$0xff]  ;;  %v349_v11 = vld [vmem:[#allocation5 + $0x278] sm:$0xff]  ;;  %v343_v17 = vld [vmem:[#allocation5 + $0x248] sm:$0xff] }
  0x57   :  { %593 = vmatpush.msra.mxu0 %v354_v12  ;;  %613 = vmatpush.msra.mxu1 %v402_v14  ;;  %v448_v12 = vld [vmem:[#allocation5 + $0x590] sm:$0xff]  ;;  %v346_v14 = vld [vmem:[#allocation5 + $0x260] sm:$0xff] }
  0x58   :  { %633 = vmatpush.msra.mxu2 %v450_v15  ;;  %546 = vmatmul.f32.vlgmr.msrb.gmra.mxu1 %v1055_v0  ;;  %v445_v15 = vld [vmem:[#allocation5 + $0x578] sm:$0xff] }
  0x59   :  { %594 = vmatpush.msra.mxu0 %v351_v16  ;;  %614 = vmatpush.msra.mxu1 %v399_v18  ;;  %v394_v16 = vld [vmem:[#allocation5 + $0x3e0] sm:$0xff] }
  0x5a   :  { %634 = vmatpush.msra.mxu2 %v447_v19  ;;  %653 = vmatpush.msra.mxu3 %v307_v27  ;;  %v442_v18 = vld [vmem:[#allocation5 + $0x560] sm:$0xff]  ;;  %v391_v19 = vld [vmem:[#allocation5 + $0x3c8] sm:$0xff]  ;;  %v436_v27 = vld [vmem:[#allocation5 + $0x530] sm:$0xff] }
  0x5b   :  { %595 = vmatpush.msra.mxu0 %v348_v20  ;;  %615 = vmatpush.msra.mxu1 %v396_v21  ;;  %v340_v20 = vld [vmem:[#allocation5 + $0x230] sm:$0xff]  ;;  %v439_v21 = vld [vmem:[#allocation5 + $0x548] sm:$0xff] }
  0x5c   :  { %635 = vmatpush.msra.mxu2 %v444_v22  ;;  %654 = vmatpush.msra.mxu3 %v304_v31  ;;  %v337_v22 = vld [vmem:[#allocation5 + $0x218] sm:$0xff] }
  0x5d   :  { %596 = vmatpush.msra.mxu0 %v345_v23  ;;  %566 = vmatmul.f32.vlgmr.msrb.gmra.mxu2 %v1055_v0  ;;  %v334_v23 = vld [vmem:[#allocation5 + $0x200] sm:$0xff]  ;;  %v433_v31 = vld [vmem:[#allocation5 + $0x518] sm:$0xff] }
  0x5e   :  { %616 = vmatpush.msra.mxu1 %v393_v24  ;;  %636 = vmatpush.msra.mxu2 %v441_v25  ;;  %v283_v24 = vld [vmem:[#allocation5 + $0x68] sm:$0xff] }
  0x5f   :  { %597 = vmatpush.msra.mxu0 %v342_v26  ;;  %655 = vmatpush.msra.mxu3 %v301_v35  ;;  %v331_v25 = vld [vmem:[#allocation5 + $0x1e8] sm:$0xff]  ;;  %v388_v26 = vld [vmem:[#allocation5 + $0x3b0] sm:$0xff]  ;;  %v430_v35 = vld [vmem:[#allocation5 + $0x500] sm:$0xff] }
  0x60   :  { %617 = vmatpush.msra.mxu1 %v390_v28  ;;  %637 = vmatpush.msra.mxu2 %v438_v29  ;;  %v280_v28 = vld [vmem:[#allocation5 + $0x50] sm:$0xff] }
  0x61   :  { %598 = vmatpush.msra.mxu0 %v339_v30  ;;  %656 = vmatpush.msra.mxu3 %v298_v39  ;;  %v328_v29 = vld [vmem:[#allocation5 + $0x1d0] sm:$0xff]  ;;  %v385_v30 = vld [vmem:[#allocation5 + $0x398] sm:$0xff]  ;;  %v427_v39 = vld [vmem:[#allocation5 + $0x4e8] sm:$0xff] }
  0x62   :  { %618 = vmatpush.msra.mxu1 %v387_v32  ;;  %638 = vmatpush.msra.mxu2 %v435_v33  ;;  %v277_v32 = vld [vmem:[#allocation5 + $0x38] sm:$0xff] }
  0x63   :  { %599 = vmatpush.msra.mxu0 %v336_v34  ;;  %657 = vmatpush.msra.mxu3 %v295_v43  ;;  %v325_v33 = vld [vmem:[#allocation5 + $0x1b8] sm:$0xff]  ;;  %v382_v34 = vld [vmem:[#allocation5 + $0x380] sm:$0xff]  ;;  %v424_v43 = vld [vmem:[#allocation5 + $0x4d0] sm:$0xff] }
  0x64   :  { %619 = vmatpush.msra.mxu1 %v384_v36  ;;  %639 = vmatpush.msra.mxu2 %v432_v37  ;;  %v274_v36 = vld [vmem:[#allocation5 + $0x20] sm:$0xff] }
  0x65   :  { %600 = vmatpush.msra.mxu0 %v333_v38  ;;  %658 = vmatpush.msra.mxu3 %v292_v47  ;;  %v322_v37 = vld [vmem:[#allocation5 + $0x1a0] sm:$0xff]  ;;  %v379_v38 = vld [vmem:[#allocation5 + $0x368] sm:$0xff] }
  0x66   :  { %620 = vmatpush.msra.mxu1 %v381_v40  ;;  %640 = vmatpush.msra.mxu2 %v429_v41  ;;  %v271_v40 = vld [vmem:[#allocation5 + $0x8] sm:$0xff]  ;;  %v418_v47 = vld [vmem:[#allocation5 + $0x4a0] sm:$0xff] }
  0x67   :  { %601 = vmatpush.msra.mxu0 %v330_v42  ;;  %659 = vmatpush.msra.mxu3 %v289_v51  ;;  %v319_v41 = vld [vmem:[#allocation5 + $0x188] sm:$0xff]  ;;  %v376_v42 = vld [vmem:[#allocation5 + $0x350] sm:$0xff] }
  0x68   :  { %621 = vmatpush.msra.mxu1 %v378_v44  ;;  %641 = vmatpush.msra.mxu2 %v426_v45  ;;  %v373_v44 = vld [vmem:[#allocation5 + $0x338] sm:$0xff] }
  0x69   :  { %602 = vmatpush.msra.mxu0 %v327_v46  ;;  %660 = vmatpush.msra.mxu3 %v286_v56  ;;  %v421_v45 = vld [vmem:[#allocation5 + $0x4b8] sm:$0xff]  ;;  %v370_v46 = vld [vmem:[#allocation5 + $0x320] sm:$0xff] }
  0x6a   :  { %622 = vmatpush.msra.mxu1 %v375_v48  ;;  %642 = vmatpush.msra.mxu2 %v423_v49  ;;  %v367_v48 = vld [vmem:[#allocation5 + $0x308] sm:$0xff]  ;;  %v256_v56 = vld [vmem:[%s1116_s5] sm:$0xf] }
  0x6b   :  { %603 = vmatpush.msra.mxu0 %v324_v50  ;;  %661 = vmatpush.msra.mxu3 %v283_v24  ;;  %v415_v49 = vld [vmem:[#allocation5 + $0x488] sm:$0xff]  ;;  %v148_v50 = vld [vmem:[%s1114_s3] sm:$0xf] }
  0x6c   :  { %526 = vmatmul.f32.vlgmr.msrb.gmra.mxu0 %v1055_v0  ;;  %623 = vmatpush.msra.mxu1 %v372_v52  ;;  %v457_v0 = vld [vmem:[#allocation5 + $0x5d8] sm:$0xff]  ;;  %v150_v51 = vperm.slane %v148_v50, 0  ;;  %v151_v52 = vperm.slane %v148_v50, 1 }
  0x6d   :  { %604 = vmatpush.msra.mxu0 %v321_v53  ;;  %643 = vmatpush.msra.mxu2 %v420_v54  ;;  %v242_v53 = vld [vmem:[%s1115_s4] sm:$0xf] }
  0x6e   :  { %624 = vmatpush.msra.mxu1 %v369_v55  ;;  %662 = vmatpush.msra.mxu3 %v280_v28  ;;  %v356_v28 = vld [vmem:[#allocation5 + $0x2b0] sm:$0xff] }
  0x6f   :  { %605 = vmatpush.msra.mxu0 %v318_v57  ;;  %644 = vmatpush.msra.mxu2 %v417_v58  ;;  %v244_v58 = vperm.slane %v242_v53, 0 }
  0x70   :  { %625 = vmatpush.msra.mxu1 %v366_v60  ;;  %663 = vmatpush.msra.mxu3 %v277_v32  ;;  %v245_v60 = vperm.slane %v242_v53, 1  ;;  %v353_v32 = vld [vmem:[#allocation5 + $0x298] sm:$0xff] }
  0x71   :  { %670 = vmatpush.msrb.mxu0 %v364_v59  ;;  %645 = vmatpush.msra.mxu2 %v414_v61 }
  0x72   :  { %690 = vmatpush.msrb.mxu1 %v412_v62  ;;  %664 = vmatpush.msra.mxu3 %v274_v36  ;;  %v350_v36 = vld [vmem:[#allocation5 + $0x280] sm:$0xff] }
  0x73   :  { %671 = vmatpush.msrb.mxu0 %v361_v63  ;;  %710 = vmatpush.msrb.mxu2 %v460_v1  ;;  %v259_v63 = vperm.slane %v256_v56, 1  ;;  %v258_v1 = vperm.slane %v256_v56, 0 }
  0x74   :  { %691 = vmatpush.msrb.mxu1 %v409_v2  ;;  %665 = vmatpush.msra.mxu3 %v271_v40  ;;  %v152_v2 = vperm.slane %v148_v50, 2  ;;  %v347_v40 = vld [vmem:[#allocation5 + $0x268] sm:$0xff] }
  0x75   :  { %672 = vmatpush.msrb.mxu0 %v358_v3  ;;  %711 = vmatpush.msrb.mxu2 %v457_v0  ;;  %v153_v3 = vperm.slane %v148_v50, 3  ;;  %v446_v50 = vld [vmem:[#allocation5 + $0x580] sm:$0xff] }
  0x76   :  { %692 = vmatpush.msrb.mxu1 %v406_v4 }
  0x77   :  { %673 = vmatpush.msrb.mxu0 %v355_v5  ;;  %712 = vmatpush.msrb.mxu2 %v454_v6 }
  0x78   :  { %693 = vmatpush.msrb.mxu1 %v403_v7 }
  0x79   :  { %674 = vmatpush.msrb.mxu0 %v352_v8  ;;  %713 = vmatpush.msrb.mxu2 %v451_v9  ;;  %v317_v9 = vld [vmem:[#allocation5 + $0x178] sm:$0xff] }
  0x7a   :  { %694 = vmatpush.msrb.mxu1 %v400_v10  ;;  %v365_v10 = vld [vmem:[#allocation5 + $0x2f8] sm:$0xff] }
  0x7b   :  { %675 = vmatpush.msrb.mxu0 %v349_v11  ;;  %714 = vmatpush.msrb.mxu2 %v448_v12  ;;  %v246_v12 = vperm.slane %v242_v53, 2 }
  0x7c   :  { %695 = vmatpush.msrb.mxu1 %v397_v13 }
  0x7d   :  { %676 = vmatpush.msrb.mxu0 %v346_v14  ;;  %715 = vmatpush.msrb.mxu2 %v445_v15  ;;  %v247_v14 = vperm.slane %v242_v53, 3  ;;  %v314_v15 = vld [vmem:[#allocation5 + $0x160] sm:$0xff]  ;;  %v395_v53 = vld [vmem:[#allocation5 + $0x3e8] sm:$0xff] }
  0x7e   :  { %696 = vmatpush.msrb.mxu1 %v394_v16  ;;  %v362_v16 = vld [vmem:[#allocation5 + $0x2e0] sm:$0xff] }
  0x7f   :  { %677 = vmatpush.msrb.mxu0 %v343_v17  ;;  %716 = vmatpush.msrb.mxu2 %v442_v18  ;;  %v260_v18 = vperm.slane %v256_v56, 2 }
  0x80   :  { %697 = vmatpush.msrb.mxu1 %v391_v19 }
  0x81   :  { %678 = vmatpush.msrb.mxu0 %v340_v20  ;;  %717 = vmatpush.msrb.mxu2 %v439_v21  ;;  %v261_v20 = vperm.slane %v256_v56, 3  ;;  %v311_v21 = vld [vmem:[#allocation5 + $0x148] sm:$0xff] }
  0x82   :  { %698 = vmatpush.msrb.mxu1 %v388_v26  ;;  %v335_v56 = vld [vmem:[#allocation5 + $0x208] sm:$0xff] }
  0x83   :  { %679 = vmatpush.msrb.mxu0 %v337_v22  ;;  %718 = vmatpush.msrb.mxu2 %v436_v27  ;;  %v359_v22 = vld [vmem:[#allocation5 + $0x2c8] sm:$0xff]  ;;  %v308_v27 = vld [vmem:[#allocation5 + $0x130] sm:$0xff] }
  0x84   :  { %699 = vmatpush.msrb.mxu1 %v385_v30  ;;  %v461_v30 = vld [vmem:[#allocation5 + $0x5f8] sm:$0xff] }
  0x85   :  { %680 = vmatpush.msrb.mxu0 %v334_v23  ;;  %719 = vmatpush.msrb.mxu2 %v433_v31  ;;  %v305_v31 = vld [vmem:[#allocation5 + $0x118] sm:$0xff] }
  0x86   :  { %700 = vmatpush.msrb.mxu1 %v382_v34  ;;  %v458_v34 = vld [vmem:[#allocation5 + $0x5e0] sm:$0xff] }
  0x87   :  { %681 = vmatpush.msrb.mxu0 %v331_v25  ;;  %720 = vmatpush.msrb.mxu2 %v430_v35  ;;  %v302_v35 = vld [vmem:[#allocation5 + $0x100] sm:$0xff] }
  0x88   :  { %701 = vmatpush.msrb.mxu1 %v379_v38  ;;  %v455_v38 = vld [vmem:[#allocation5 + $0x5c8] sm:$0xff] }
  0x89   :  { %682 = vmatpush.msrb.mxu0 %v328_v29  ;;  %721 = vmatpush.msrb.mxu2 %v427_v39  ;;  %v413_v29 = vld [vmem:[#allocation5 + $0x478] sm:$0xff]  ;;  %v299_v39 = vld [vmem:[#allocation5 + $0xe8] sm:$0xff] }
  0x8a   :  { %702 = vmatpush.msrb.mxu1 %v376_v42  ;;  %v452_v42 = vld [vmem:[#allocation5 + $0x5b0] sm:$0xff] }
  0x8b   :  { %683 = vmatpush.msrb.mxu0 %v325_v33  ;;  %722 = vmatpush.msrb.mxu2 %v424_v43  ;;  %v410_v33 = vld [vmem:[#allocation5 + $0x460] sm:$0xff]  ;;  %v296_v43 = vld [vmem:[#allocation5 + $0xd0] sm:$0xff] }
  0x8c   :  { %703 = vmatpush.msrb.mxu1 %v373_v44  ;;  %v344_v44 = vld [vmem:[#allocation5 + $0x250] sm:$0xff] }
  0x8d   :  { %684 = vmatpush.msrb.mxu0 %v322_v37  ;;  %723 = vmatpush.msrb.mxu2 %v421_v45  ;;  %v407_v37 = vld [vmem:[#allocation5 + $0x448] sm:$0xff]  ;;  %v401_v45 = vld [vmem:[#allocation5 + $0x418] sm:$0xff] }
  0x8e   :  { %704 = vmatpush.msrb.mxu1 %v370_v46  ;;  %v449_v46 = vld [vmem:[#allocation5 + $0x598] sm:$0xff] }
  0x8f   :  { %685 = vmatpush.msrb.mxu0 %v319_v41  ;;  %724 = vmatpush.msrb.mxu2 %v418_v47  ;;  %v404_v41 = vld [vmem:[#allocation5 + $0x430] sm:$0xff]  ;;  %v293_v47 = vld [vmem:[#allocation5 + $0xb8] sm:$0xff] }
  0x90   :  { %705 = vmatpush.msrb.mxu1 %v367_v48  ;;  %v341_v48 = vld [vmem:[#allocation5 + $0x238] sm:$0xff] }
  0x91   :  { %725 = vmatpush.msrb.mxu2 %v415_v49  ;;  %v398_v49 = vld [vmem:[#allocation5 + $0x400] sm:$0xff] }
  0xac   :  { %v175_v54 = vpop.f32.mrf.mxu0  ;;  %v195_v55 = vpop.f32.mrf.mxu1 }
  0xad   :  { %v176_v57 = vadd.f32 %v175_v54, %v150_v51  ;;  %v196_v59 = vadd.f32 %v195_v55, %v151_v52  ;;  %v290_v51 = vld [vmem:[#allocation5 + $0xa0] sm:$0xff]  ;;  %v443_v54 = vld [vmem:[#allocation5 + $0x568] sm:$0xff] }
  0xae   :  { %v338_v52 = vld [vmem:[#allocation5 + $0x220] sm:$0xff]  ;;  %v287_v55 = vld [vmem:[#allocation5 + $0x88] sm:$0xff] }
  0xaf   :  { %v238_v61 = vmax.f32 %v176_v57, 0.0  ;;  %v239_v62 = vmax.f32 %v196_v59, 0.0  ;;  %v392_v57 = vld [vmem:[#allocation5 + $0x3d0] sm:$0xff] }
  0xb0   :  { %v284_v59 = vld [vmem:[#allocation5 + $0x70] sm:$0xff] }
  0xb1   :  { %v252_v0 = vmul.f32 %v244_v58, %v238_v61  ;;  %v253_v4 = vmul.f32 %v245_v60, %v239_v62  ;;  %v440_v58 = vld [vmem:[#allocation5 + $0x550] sm:$0xff]  ;;  %v389_v61 = vld [vmem:[#allocation5 + $0x3b8] sm:$0xff] }
  0xb2   :  { %v332_v60 = vld [vmem:[#allocation5 + $0x1f0] sm:$0xff]  ;;  %v437_v62 = vld [vmem:[#allocation5 + $0x538] sm:$0xff] }
  0xb3   :  { %v1073_v5 = vadd.f32 %v259_v63, %v253_v4  ;;  %v215_v6 = vpop.f32.mrf.mxu2  ;;  %v235_v7 = vpop.f32.mrf.mxu3  ;;  %v1075_v8 = vadd.f32 %v258_v1, %v252_v0  ;;  %v281_v63 = vld [vmem:[#allocation5 + $0x58] sm:$0xff]  ;;  %v278_v0 = vld [vmem:[#allocation5 + $0x40] sm:$0xff] }
  0xb4   :  { %v216_v11 = vadd.f32 %v215_v6, %v152_v2  ;;  %v236_v13 = vadd.f32 %v235_v7, %v153_v3  ;;  %v329_v1 = vld [vmem:[#allocation5 + $0x1d8] sm:$0xff]  ;;  %v386_v2 = vld [vmem:[#allocation5 + $0x3a0] sm:$0xff]  ;;  %v383_v6 = vld [vmem:[#allocation5 + $0x388] sm:$0xff] }
  0xb5   :  { %586 = vmatmul.f32.vlgmr.msrb.gmra.mxu3 %v1075_v8  ;;  %606 = vmatmul.f32.vlgmr.msra.gmra.mxu0 %v1073_v5  ;;  %v434_v3 = vld [vmem:[#allocation5 + $0x520] sm:$0xff]  ;;  %v431_v7 = vld [vmem:[#allocation5 + $0x508] sm:$0xff] }
  0xb6   :  { %v240_v17 = vmax.f32 %v216_v11, 0.0  ;;  %v241_v19 = vmax.f32 %v236_v13, 0.0  ;;  %730 = vmatpush.msrb.mxu3 %v317_v9  ;;  %750 = vmatpush.msra.mxu0 %v365_v10  ;;  %v326_v4 = vld [vmem:[#allocation5 + $0x1c0] sm:$0xff]  ;;  %v275_v9 = vld [vmem:[#allocation5 + $0x28] sm:$0xff]  ;;  %v380_v11 = vld [vmem:[#allocation5 + $0x370] sm:$0xff] }
  0xb7   :  { %v323_v10 = vld [vmem:[#allocation5 + $0x1a8] sm:$0xff]  ;;  %v272_v13 = vld [vmem:[#allocation5 + $0x10] sm:$0xff] }
  0xb8   :  { %v254_v23 = vmul.f32 %v246_v12, %v240_v17  ;;  %v255_v24 = vmul.f32 %v247_v14, %v241_v19  ;;  %731 = vmatpush.msrb.mxu3 %v314_v15  ;;  %751 = vmatpush.msra.mxu0 %v362_v16  ;;  %v428_v12 = vld [vmem:[#allocation5 + $0x4f0] sm:$0xff]  ;;  %v377_v15 = vld [vmem:[#allocation5 + $0x358] sm:$0xff]  ;;  %v374_v17 = vld [vmem:[#allocation5 + $0x340] sm:$0xff] }
  0xb9   :  { %v320_v14 = vld [vmem:[#allocation5 + $0x190] sm:$0xff]  ;;  %v425_v16 = vld [vmem:[#allocation5 + $0x4d8] sm:$0xff]  ;;  %v371_v19 = vld [vmem:[#allocation5 + $0x328] sm:$0xff] }
  0xba   :  { %v1079_v25 = vadd.f32 %v260_v18, %v254_v23  ;;  %v1081_v26 = vadd.f32 %v261_v20, %v255_v24  ;;  %732 = vmatpush.msrb.mxu3 %v311_v21  ;;  %752 = vmatpush.msra.mxu0 %v359_v22  ;;  %v422_v18 = vld [vmem:[#allocation5 + $0x4c0] sm:$0xff]  ;;  %v419_v20 = vld [vmem:[#allocation5 + $0x4a8] sm:$0xff]  ;;  %v368_v21 = vld [vmem:[#allocation5 + $0x310] sm:$0xff] }
  0xbb   :  { %v416_v22 = vld [vmem:[#allocation5 + $0x490] sm:$0xff] }
  0xbc   :  { %626 = vmatmul.f32.vlgmr.msra.gmra.mxu1 %v1079_v25  ;;  %646 = vmatmul.f32.vlgmr.msra.gmra.mxu2 %v1081_v26 }
  0xbd   :  { %733 = vmatpush.msrb.mxu3 %v308_v27  ;;  %753 = vmatpush.msra.mxu0 %v356_v28 }
  0xbe   :  { %770 = vmatpush.msra.mxu1 %v413_v29  ;;  %790 = vmatpush.msra.mxu2 %v461_v30  ;;  %v810_v30 = vld [vmem:[%s1119_s8] sm:$0x7] }
  0xbf   :  { %666 = vmatmul.f32.vlgmr.msra.gmra.mxu3 %v1075_v8  ;;  %686 = vmatmul.f32.vlgmr.msrb.gmra.mxu0 %v1073_v5 }
  0xc0   :  { %734 = vmatpush.msrb.mxu3 %v305_v31  ;;  %754 = vmatpush.msra.mxu0 %v353_v32 }
  0xc1   :  { %771 = vmatpush.msra.mxu1 %v410_v33  ;;  %791 = vmatpush.msra.mxu2 %v458_v34  ;;  %v812_v33 = vperm.slane %v810_v30, 0 }
  0xc2   :  { %735 = vmatpush.msrb.mxu3 %v302_v35  ;;  %755 = vmatpush.msra.mxu0 %v350_v36 }
  0xc3   :  { %772 = vmatpush.msra.mxu1 %v407_v37  ;;  %792 = vmatpush.msra.mxu2 %v455_v38 }
  0xc4   :  { %736 = vmatpush.msrb.mxu3 %v299_v39  ;;  %756 = vmatpush.msra.mxu0 %v347_v40 }
  0xc5   :  { %773 = vmatpush.msra.mxu1 %v404_v41  ;;  %793 = vmatpush.msra.mxu2 %v452_v42  ;;  %v824_v41 = vld [vmem:[%s1120_s9] sm:$0xff] }
  0xc6   :  { %706 = vmatmul.f32.vlgmr.msrb.gmra.mxu1 %v1079_v25  ;;  %726 = vmatmul.f32.vlgmr.msrb.gmra.mxu2 %v1081_v26 }
  0xc7   :  { %737 = vmatpush.msrb.mxu3 %v296_v43  ;;  %757 = vmatpush.msra.mxu0 %v344_v44  ;;  %v813_v43 = vperm.slane %v810_v30, 1 }
  0xc8   :  { %774 = vmatpush.msra.mxu1 %v401_v45  ;;  %794 = vmatpush.msra.mxu2 %v449_v46 }
  0xc9   :  { %738 = vmatpush.msrb.mxu3 %v293_v47  ;;  %758 = vmatpush.msra.mxu0 %v341_v48  ;;  %v825_v48 = vld [vmem:[%s1120_s9 + $0x8] sm:$0xff] }
  0xca   :  { %775 = vmatpush.msra.mxu1 %v398_v49  ;;  %795 = vmatpush.msra.mxu2 %v446_v50 }
  0xcb   :  { %739 = vmatpush.msrb.mxu3 %v290_v51  ;;  %759 = vmatpush.msra.mxu0 %v338_v52 }
  0xcc   :  { %776 = vmatpush.msra.mxu1 %v395_v53  ;;  %796 = vmatpush.msra.mxu2 %v443_v54 }
  0xcd   :  { %740 = vmatpush.msrb.mxu3 %v287_v55  ;;  %760 = vmatpush.msra.mxu0 %v335_v56  ;;  %v814_v55 = vperm.slane %v810_v30, 2 }
  0xce   :  { %777 = vmatpush.msra.mxu1 %v392_v57  ;;  %797 = vmatpush.msra.mxu2 %v440_v58 }
  0xcf   :  { %741 = vmatpush.msrb.mxu3 %v284_v59  ;;  %761 = vmatpush.msra.mxu0 %v332_v60  ;;  %v826_v60 = vld [vmem:[%s1120_s9 + $0x10] sm:$0xff] }
  0xd0   :  { %778 = vmatpush.msra.mxu1 %v389_v61  ;;  %798 = vmatpush.msra.mxu2 %v437_v62 }
  0xd1   :  { %742 = vmatpush.msrb.mxu3 %v281_v63  ;;  %762 = vmatpush.msra.mxu0 %v329_v1 }
  0xd2   :  { %779 = vmatpush.msra.mxu1 %v386_v2  ;;  %799 = vmatpush.msra.mxu2 %v434_v3  ;;  %v888_v2 = vstv %s1111_s0 }
  0xd3   :  { %743 = vmatpush.msrb.mxu3 %v278_v0  ;;  %763 = vmatpush.msra.mxu0 %v326_v4 }
  0xd4   :  { %780 = vmatpush.msra.mxu1 %v383_v6  ;;  %800 = vmatpush.msra.mxu2 %v431_v7 }
  0xd5   :  { %744 = vmatpush.msrb.mxu3 %v275_v9  ;;  %764 = vmatpush.msra.mxu0 %v323_v10  ;;  %v547_v24 = vpop.f32.mrf.mxu1 }
  0xd6   :  { %781 = vmatpush.msra.mxu1 %v380_v11  ;;  %801 = vmatpush.msra.mxu2 %v428_v12 }
  0xd7   :  { %745 = vmatpush.msrb.mxu3 %v272_v13  ;;  %765 = vmatpush.msra.mxu0 %v320_v14 }
  0xd8   :  { %782 = vmatpush.msra.mxu1 %v377_v15  ;;  %802 = vmatpush.msra.mxu2 %v425_v16 }
  0xd9   :  { %746 = vmatmul.f32.vlgmr.msrb.gmra.mxu3 %v1075_v8  ;;  %766 = vmatmul.f32.vlgmr.msra.gmra.mxu0 %v1073_v5 }
  0xda   :  { %783 = vmatpush.msra.mxu1 %v374_v17  ;;  %803 = vmatpush.msra.mxu2 %v422_v18 }
  0xdc   :  { %784 = vmatpush.msra.mxu1 %v371_v19  ;;  %804 = vmatpush.msra.mxu2 %v419_v20 }
  0xde   :  { %785 = vmatpush.msra.mxu1 %v368_v21  ;;  %805 = vmatpush.msra.mxu2 %v416_v22 }
  0xdf   :  { %786 = vmatmul.f32.vlgmr.msra.gmra.mxu1 %v1079_v25  ;;  %806 = vmatmul.f32.vlgmr.msra.gmra.mxu2 %v1081_v26 }
  0xe0   :  { %v567_v27 = vpop.f32.mrf.mxu2 }
  0xe9   :  { %v527_v23 = vpop.f32.mrf.mxu0 }
 0x132   :  { %v607_v5 = vpop.f32.mrf.mxu0 }
 0x138   :  { %v587_v8 = vpop.f32.mrf.mxu3 }
 0x139   :  { %v588_v28 = vadd.f32 %v587_v8, %v527_v23  ;;  %v627_v31 = vpop.f32.mrf.mxu1 }
 0x13b   :  { %v608_v29 = vadd.f32 %v607_v5, %v588_v28 }
 0x13c   :  { %v687_v26 = vpop.f32.mrf.mxu0 }
 0x13d   :  { %v628_v32 = vadd.f32 %v627_v31, %v608_v29 }
 0x13f   :  { %v647_v34 = vpop.f32.mrf.mxu2 }
 0x140   :  { %v648_v35 = vadd.f32 %v647_v34, %v628_v32 }
 0x142   :  { %v818_v36 = vadd.f32 %v812_v33, %v648_v35  ;;  %v667_v25 = vpop.f32.mrf.mxu3 }
 0x143   :  { %v668_v37 = vadd.f32 %v667_v25, %v547_v24  ;;  %v707_v40 = vpop.f32.mrf.mxu1 }
 0x144   :  { %v821_v38 = vmax.f32 %v818_v36, 0.0 }
 0x145   :  { %v688_v39 = vadd.f32 %v687_v26, %v668_v37 }
 0x146   :  { %842 = vmatpush.xpose.msra.mxu3 %v821_v38 }
 0x147   :  { %v708_v42 = vadd.f32 %v707_v40, %v688_v39 }
 0x149   :  { %v727_v44 = vpop.f32.mrf.mxu2  ;;  %843 = vmatmul.f32.vlgmr.msra.gmra.mxu3 %v824_v41 }
 0x14a   :  { %v728_v45 = vadd.f32 %v727_v44, %v708_v42 }
 0x14c   :  { %v819_v46 = vadd.f32 %v813_v43, %v728_v45 }
 0x14e   :  { %v822_v47 = vmax.f32 %v819_v46, 0.0 }
 0x150   :  { %862 = vmatpush.xpose.msrb.mxu3 %v822_v47 }
 0x153   :  { %863 = vmatmul.f32.vlgmr.msrb.gmra.mxu3 %v825_v48 }
 0x156   :  { %v767_v51 = vpop.f32.mrf.mxu0 }
 0x15c   :  { %v747_v49 = vpop.f32.mrf.mxu3  ;;  %v787_v53 = vpop.f32.mrf.mxu1 }
 0x15d   :  { %v748_v50 = vadd.f32 %v747_v49, %v567_v27 }
 0x15f   :  { %v768_v52 = vadd.f32 %v767_v51, %v748_v50 }
 0x161   :  { %v788_v54 = vadd.f32 %v787_v53, %v768_v52 }
 0x162   :  { %v807_v56 = vpop.f32.mrf.mxu2 }
 0x163   :  { %v808_v57 = vadd.f32 %v807_v56, %v788_v54 }
 0x165   :  { %v820_v58 = vadd.f32 %v814_v55, %v808_v57 }
 0x167   :  { %v823_v59 = vmax.f32 %v820_v58, 0.0 }
 0x169   :  { %882 = vmatpush.xpose.msra.mxu3 %v823_v59 }
 0x16c   :  { %883 = vmatmul.f32.vlgmr.msra.gmra.mxu3 %v826_v60 }
 0x1cc   :  { %v844_v61 = vpop.f32.mrf.mxu3 }
 0x1d6   :  { %v864_v62 = vpop.f32.mrf.mxu3 }
 0x1d7   :  { %v865_v63 = vadd.f32 %v864_v62, %v844_v61 }
 0x1ef   :  { %v884_v1 = vpop.f32.mrf.mxu3 }
 0x1f0   :  { %v885_v3 = vadd.f32 %v884_v1, %v865_v63 }
 0x1f2   :  { %v889_v0 = vadd.f32 %v888_v2, %v885_v3 }
 0x1f4   :  { %891 = vst.msk [vmem:[%s1121_s10] sm:$0x1] %vm890_vm0, %v889_v0 }
 0x1f5   :  { %896 = vsyncpa [#allocation4], 1 }
 0x1f6   :  { %897 = vsyncpa [#allocation6], 1 }

</bundles_post_ra>
